<compile_context>
chip_gen: v7x
topology: tpu7x:2x2x1
jax: 0.10.0
libtpu: 0.0.40
codegen_flags: <defaults>
</compile_context>

<pallas_src>
import functools

import jax
import jax.numpy as jnp
from jax.experimental import pallas as pl
from jax.experimental.pallas import tpu as pltpu

SUB, LANE = 8, 128


def _round_up(n, m):
    return ((n + m - 1) // m) * m


def _pad_axis(x, target, axis):
    pad = target - x.shape[axis]
    if pad <= 0:
        return x
    widths = [(0, 0)] * x.ndim
    widths[axis] = (0, pad)
    return jnp.pad(x, widths)


def _make_critic_kernel(T, Hp, Fp):
    """Kernel with static T / padded dims closed over."""

    def kernel(x_ref, wih_ref, whh_ref, w1_ref, small_ref, out_ref, xg_sc):
        Bp = out_ref.shape[0]          # padded batch (multiple of 8)

        # ---- Packed small operands (one input => one DMA), lane-aligned ----
        # layout along lanes: [ gate bias (4Hp) | b1 (Fp) | w2 (Fp) | b2 (128) ]
        b_gates = small_ref[:, 0:4 * Hp]                               # (1,4Hp)
        b1 = small_ref[:, 4 * Hp:4 * Hp + Fp]                          # (1, Fp)
        w2 = small_ref[:, 4 * Hp + Fp:4 * Hp + 2 * Fp]                 # (1, Fp)
        b2 = small_ref[:, 4 * Hp + 2 * Fp:4 * Hp + 2 * Fp + LANE]      # (1,128)

        # ---- Hoisted input projection for ALL time steps (one MXU matmul) ----
        # x_ref: (T*Bp, Dp); wih_ref: (Dp, 4Hp); bias added once.
        xg_sc[...] = (jnp.dot(x_ref[...], wih_ref[...],
                              preferred_element_type=jnp.float32) + b_gates)

        def step(t, carry):
            h, c = carry
            row = pl.multiple_of(t * Bp, Bp)
            xg = xg_sc[pl.ds(row, Bp), :]
            # Per-gate recurrent matmuls against lane-aligned (Hp,Hp) column
            # blocks of whh_ref, read from VMEM in-loop (not held live across
            # the unrolled loop).  EUP nonlinearity of gate g overlaps the MXU
            # push of gate g+1.  PyTorch gate order: i, f, g, o.
            i_g = jax.nn.sigmoid(
                xg[:, 0 * Hp:1 * Hp]
                + jnp.dot(h, whh_ref[:, 0 * Hp:1 * Hp],
                          preferred_element_type=jnp.float32))
            f_g = jax.nn.sigmoid(
                xg[:, 1 * Hp:2 * Hp]
                + jnp.dot(h, whh_ref[:, 1 * Hp:2 * Hp],
                          preferred_element_type=jnp.float32))
            g_g = jnp.tanh(
                xg[:, 2 * Hp:3 * Hp]
                + jnp.dot(h, whh_ref[:, 2 * Hp:3 * Hp],
                          preferred_element_type=jnp.float32))
            o_g = jax.nn.sigmoid(
                xg[:, 3 * Hp:4 * Hp]
                + jnp.dot(h, whh_ref[:, 3 * Hp:4 * Hp],
                          preferred_element_type=jnp.float32))
            c_new = f_g * c + i_g * g_g
            h_new = o_g * jnp.tanh(c_new)
            return h_new, c_new

        h0 = jnp.zeros((Bp, Hp), jnp.float32)
        c0 = jnp.zeros((Bp, Hp), jnp.float32)
        h_last, _ = jax.lax.fori_loop(0, T, step, (h0, c0), unroll=True)

        # ---- Value head: relu(Linear) -> Linear ----
        hid = jnp.maximum(
            jnp.dot(h_last, w1_ref[...], preferred_element_type=jnp.float32)
            + b1, 0.0)
        # (B,F)@(F,1) is a degenerate MXU shape -> VPU multiply + lane reduce.
        val = jnp.sum(hid * w2, axis=-1, keepdims=True)                # (Bp,1)
        # Lane-dense output (unmasked vst); wrapper slices lane 0.
        out_ref[...] = val + b2

    return kernel


def prepare_params(params, D):
    """One-time weight padding/packing.  Call once and reuse the result; the
    per-call forward then only pads/transposes the activation."""
    H = params["whh_t"].shape[0]
    F = params["w1"].shape[1]
    Dp = _round_up(D, LANE)
    Hp = _round_up(H, LANE)
    Fp = _round_up(F, LANE)

    # Pad each of the 4 gate blocks from H to Hp separately so gate boundaries
    # are lane-aligned, then pad the contraction dim.
    def pad_gate_w(w_t, in_dim, in_pad):                     # (in,4H)->(in_pad,4Hp)
        w4 = w_t.reshape(in_dim, 4, H)
        w4 = _pad_axis(_pad_axis(w4, Hp, 2), in_pad, 0)
        return w4.reshape(in_pad, 4 * Hp)

    wih = pad_gate_w(params["wih_t"], D, Dp)                 # (Dp, 4Hp)
    whh = pad_gate_w(params["whh_t"], H, Hp)                 # (Hp, 4Hp)

    # NOTE: padded weight columns / bias lanes are exactly zero, so the padded
    # hidden lanes stay 0 through the recurrence (sigmoid(0)*tanh(0)=0) and
    # contribute nothing through w1 (whose padded rows are also zero).
    b = (params["b_ih"] + params["b_hh"]).reshape(4, H)
    b = _pad_axis(b, Hp, 1).reshape(1, 4 * Hp)               # (1, 4Hp)
    b1 = _pad_axis(params["b1"], Fp, 1)                      # (1, Fp)
    w2 = _pad_axis(params["w2"].reshape(1, F), Fp, 1)        # (1, Fp)
    b2 = jnp.broadcast_to(params["b2"].reshape(1, 1), (1, LANE))
    small = jnp.concatenate([b, b1, w2, b2], axis=1)         # (1, 4Hp+2Fp+128)

    w1 = _pad_axis(_pad_axis(params["w1"], Hp, 0), Fp, 1)    # (Hp, Fp)

    return {"wih": wih, "whh": whh, "w1": w1, "small": small}


@jax.jit
def critic_forward(s_btd, prep):
    """s_btd: [B, T, D] float32 (batch_first, like nn.LSTM). Returns [B, 1]."""
    B, T, D = s_btd.shape
    wih, whh, w1, small = prep["wih"], prep["whh"], prep["w1"], prep["small"]
    Dp = wih.shape[0]
    Hp = whh.shape[0]
    Fp = w1.shape[1]
    Bp = _round_up(B, SUB)

    # Time-major, padded, flattened input: (T*Bp, Dp).
    x = jnp.transpose(s_btd, (1, 0, 2)).astype(jnp.float32)      # (T, B, D)
    x = _pad_axis(_pad_axis(x, Bp, 1), Dp, 2)                    # (T, Bp, Dp)
    x2d = x.reshape(T * Bp, Dp)

    vmem = pl.BlockSpec(memory_space=pltpu.MemorySpace.VMEM)
    out = pl.pallas_call(
        _make_critic_kernel(T, Hp, Fp),
        out_shape=jax.ShapeDtypeStruct((Bp, LANE), jnp.float32),
        in_specs=[vmem] * 5,
        out_specs=vmem,
        scratch_shapes=[pltpu.VMEM((T * Bp, 4 * Hp), jnp.float32)],  # x-gates
    )(x2d, wih, whh, w1, small)
    return out[:B, :1]


def make_params(key, D, H, F):
    """Deterministic synthetic parameters (uniform +-1/sqrt(H), like PyTorch init).
    Weights are stored already transposed ([in, out]) for the kernel."""
    ks = jax.random.split(key, 8)
    u = lambda k, shape, bound: jax.random.uniform(k, shape, jnp.float32, -bound, bound)
    bh = 1.0 / jnp.sqrt(H)
    return {
        "wih_t": u(ks[0], (D, 4 * H), bh),
        "whh_t": u(ks[1], (H, 4 * H), bh),
        "b_ih":  u(ks[2], (4 * H,), bh),
        "b_hh":  u(ks[3], (4 * H,), bh),
        "w1":    u(ks[4], (H, F), 1.0 / jnp.sqrt(H)),
        "b1":    u(ks[5], (1, F), 1.0 / jnp.sqrt(H)),
        "w2":    u(ks[6], (F, 1), 1.0 / jnp.sqrt(F)),
        "b2":    u(ks[7], (1, 1), 1.0 / jnp.sqrt(F)),
    }


def critic_reference(s_btd, params):
    """Pure-JAX reference (same math as torch nn.LSTM + MLP head)."""
    B, T, D = s_btd.shape
    H = params["whh_t"].shape[0]
    b = (params["b_ih"] + params["b_hh"]).reshape(1, 4 * H)

    def step(carry, x_t):
        h, c = carry
        gates = x_t @ params["wih_t"] + h @ params["whh_t"] + b
        i = jax.nn.sigmoid(gates[:, 0 * H:1 * H])
        f = jax.nn.sigmoid(gates[:, 1 * H:2 * H])
        g = jnp.tanh(gates[:, 2 * H:3 * H])
        o = jax.nn.sigmoid(gates[:, 3 * H:4 * H])
        c = f * c + i * g
        h = o * jnp.tanh(c)
        return (h, c), None

    init = (jnp.zeros((B, H), jnp.float32), jnp.zeros((B, H), jnp.float32))
    (h_last, _), _ = jax.lax.scan(step, init, jnp.transpose(s_btd, (1, 0, 2)))
    hid = jnp.maximum(h_last @ params["w1"] + params["b1"], 0.0)
    return hid @ params["w2"] + params["b2"]


if __name__ == "__main__":
    B, T, D, H, F = 2, 8, 32, 32, 32
    key = jax.random.PRNGKey(0)
    k_x, k_p = jax.random.split(key)
    s = jax.random.normal(k_x, (B, T, D), jnp.float32)
    params = make_params(k_p, D, H, F)

    # One-time weight preparation (cached across forward calls).
    prep = jax.tree_util.tree_map(jax.block_until_ready, prepare_params(params, D))

    value = jax.block_until_ready(critic_forward(s, prep))
    ref = critic_reference(s, params)
    assert value.shape == (B, 1)
    assert jnp.allclose(value, ref, atol=1e-4, rtol=1e-4), (value, ref)
    print("KERNEL_OK")
</pallas_src>

<mosaic_0001>
module attributes {stable_mosaic.version = 11 : i64} {
  func.func @kernel(%arg0: memref<64x128xf32, #tpu.memory_space<vmem>>, %arg1: memref<128x512xf32, #tpu.memory_space<vmem>>, %arg2: memref<128x512xf32, #tpu.memory_space<vmem>>, %arg3: memref<128x128xf32, #tpu.memory_space<vmem>>, %arg4: memref<1x896xf32, #tpu.memory_space<vmem>>, %arg5: memref<8x128xf32, #tpu.memory_space<vmem>>, %arg6: memref<64x512xf32, #tpu.memory_space<vmem>>) attributes {dimension_semantics = [], scalar_prefetch = 0 : i64, scratch_operands = 1 : i64, tpu.core_type = #tpu.core_type<tc>} {
    %c0 = arith.constant 0 : index
    %c0_0 = arith.constant 0 : index
    %0 = vector.load %arg4[%c0, %c0_0] : memref<1x896xf32, #tpu.memory_space<vmem>>, vector<1x512xf32>
    %c0_1 = arith.constant 0 : index
    %c512 = arith.constant 512 : index
    %1 = vector.load %arg4[%c0_1, %c512] : memref<1x896xf32, #tpu.memory_space<vmem>>, vector<1x128xf32>
    %c0_2 = arith.constant 0 : index
    %c640 = arith.constant 640 : index
    %2 = vector.load %arg4[%c0_2, %c640] : memref<1x896xf32, #tpu.memory_space<vmem>>, vector<1x128xf32>
    %c0_3 = arith.constant 0 : index
    %c768 = arith.constant 768 : index
    %3 = vector.load %arg4[%c0_3, %c768] : memref<1x896xf32, #tpu.memory_space<vmem>>, vector<1x128xf32>
    %c0_4 = arith.constant 0 : index
    %c0_5 = arith.constant 0 : index
    %4 = vector.load %arg0[%c0_4, %c0_5] : memref<64x128xf32, #tpu.memory_space<vmem>>, vector<64x128xf32>
    %c0_6 = arith.constant 0 : index
    %c0_7 = arith.constant 0 : index
    %5 = vector.load %arg1[%c0_6, %c0_7] : memref<128x512xf32, #tpu.memory_space<vmem>>, vector<128x512xf32>
    %cst = arith.constant dense<0.000000e+00> : vector<64x512xf32>
    %6 = tpu.matmul %4, %5, %cst {dimension_numbers = #tpu.dot_dimension_numbers<[1], [0], [0], [1], [0, 0, 1, 1], [], []>} : vector<64x128xf32>, vector<128x512xf32>, vector<64x512xf32> -> vector<64x512xf32>
    %7 = vector.broadcast %0 : vector<1x512xf32> to vector<64x512xf32>
    %8 = arith.addf %6, %7 : vector<64x512xf32>
    %c0_8 = arith.constant 0 : index
    %c0_9 = arith.constant 0 : index
    %9 = vector.load %arg6[%c0_8, %c0_9] : memref<64x512xf32, #tpu.memory_space<vmem>>, vector<64x512xf32>
    tpu.vector_store %arg6[%c0_8, %c0_9], %8 {strides = array<i32>} : memref<64x512xf32, #tpu.memory_space<vmem>>, vector<64x512xf32>,
    %cst_10 = arith.constant 0.000000e+00 : f32
    %10 = vector.broadcast %cst_10 : f32 to vector<8x128xf32>
    %cst_11 = arith.constant 0.000000e+00 : f32
    %11 = vector.broadcast %cst_11 : f32 to vector<8x128xf32>
    %c0_i32 = arith.constant 0 : i32
    %c8_i32 = arith.constant 8 : i32
    %12 = arith.muli %c0_i32, %c8_i32 : i32
    %13 = tpu.assume_multiple %12, 8 : i32
    %14 = arith.index_cast %13 : i32 to index
    %c0_12 = arith.constant 0 : index
    %15 = vector.load %arg6[%14, %c0_12] : memref<64x512xf32, #tpu.memory_space<vmem>>, vector<8x512xf32>
    %16 = vector.extract_strided_slice %15 {offsets = [0, 0], sizes = [8, 128], strides = [1, 1]} : vector<8x512xf32> to vector<8x128xf32>
    %c0_13 = arith.constant 0 : index
    %c0_14 = arith.constant 0 : index
    %17 = vector.load %arg2[%c0_13, %c0_14] : memref<128x512xf32, #tpu.memory_space<vmem>>, vector<128x128xf32>
    %cst_15 = arith.constant dense<0.000000e+00> : vector<8x128xf32>
    %18 = tpu.matmul %10, %17, %cst_15 {dimension_numbers = #tpu.dot_dimension_numbers<[1], [0], [0], [1], [0, 0, 1, 1], [], []>} : vector<8x128xf32>, vector<128x128xf32>, vector<8x128xf32> -> vector<8x128xf32>
    %19 = arith.addf %16, %18 : vector<8x128xf32>
    %20 = arith.negf %19 : vector<8x128xf32>
    %21 = math.exp %20 : vector<8x128xf32>
    %cst_16 = arith.constant 1.000000e+00 : f32
    %22 = vector.broadcast %cst_16 : f32 to vector<8x128xf32>
    %23 = arith.addf %22, %21 : vector<8x128xf32>
    %24 = arith.divf %22, %23 : vector<8x128xf32>
    %25 = vector.extract_strided_slice %15 {offsets = [0, 128], sizes = [8, 128], strides = [1, 1]} : vector<8x512xf32> to vector<8x128xf32>
    %c0_17 = arith.constant 0 : index
    %c128 = arith.constant 128 : index
    %26 = vector.load %arg2[%c0_17, %c128] : memref<128x512xf32, #tpu.memory_space<vmem>>, vector<128x128xf32>
    %cst_18 = arith.constant dense<0.000000e+00> : vector<8x128xf32>
    %27 = tpu.matmul %10, %26, %cst_18 {dimension_numbers = #tpu.dot_dimension_numbers<[1], [0], [0], [1], [0, 0, 1, 1], [], []>} : vector<8x128xf32>, vector<128x128xf32>, vector<8x128xf32> -> vector<8x128xf32>
    %28 = arith.addf %25, %27 : vector<8x128xf32>
    %29 = arith.negf %28 : vector<8x128xf32>
    %30 = math.exp %29 : vector<8x128xf32>
    %cst_19 = arith.constant 1.000000e+00 : f32
    %31 = vector.broadcast %cst_19 : f32 to vector<8x128xf32>
    %32 = arith.addf %31, %30 : vector<8x128xf32>
    %33 = arith.divf %31, %32 : vector<8x128xf32>
    %34 = vector.extract_strided_slice %15 {offsets = [0, 256], sizes = [8, 128], strides = [1, 1]} : vector<8x512xf32> to vector<8x128xf32>
    %c0_20 = arith.constant 0 : index
    %c256 = arith.constant 256 : index
    %35 = vector.load %arg2[%c0_20, %c256] : memref<128x512xf32, #tpu.memory_space<vmem>>, vector<128x128xf32>
    %cst_21 = arith.constant dense<0.000000e+00> : vector<8x128xf32>
    %36 = tpu.matmul %10, %35, %cst_21 {dimension_numbers = #tpu.dot_dimension_numbers<[1], [0], [0], [1], [0, 0, 1, 1], [], []>} : vector<8x128xf32>, vector<128x128xf32>, vector<8x128xf32> -> vector<8x128xf32>
    %37 = arith.addf %34, %36 : vector<8x128xf32>
    %38 = math.tanh %37 : vector<8x128xf32>
    %39 = vector.extract_strided_slice %15 {offsets = [0, 384], sizes = [8, 128], strides = [1, 1]} : vector<8x512xf32> to vector<8x128xf32>
    %c0_22 = arith.constant 0 : index
    %c384 = arith.constant 384 : index
    %40 = vector.load %arg2[%c0_22, %c384] : memref<128x512xf32, #tpu.memory_space<vmem>>, vector<128x128xf32>
    %cst_23 = arith.constant dense<0.000000e+00> : vector<8x128xf32>
    %41 = tpu.matmul %10, %40, %cst_23 {dimension_numbers = #tpu.dot_dimension_numbers<[1], [0], [0], [1], [0, 0, 1, 1], [], []>} : vector<8x128xf32>, vector<128x128xf32>, vector<8x128xf32> -> vector<8x128xf32>
    %42 = arith.addf %39, %41 : vector<8x128xf32>
    %43 = arith.negf %42 : vector<8x128xf32>
    %44 = math.exp %43 : vector<8x128xf32>
    %cst_24 = arith.constant 1.000000e+00 : f32
    %45 = vector.broadcast %cst_24 : f32 to vector<8x128xf32>
    %46 = arith.addf %45, %44 : vector<8x128xf32>
    %47 = arith.divf %45, %46 : vector<8x128xf32>
    %48 = arith.mulf %33, %11 : vector<8x128xf32>
    %49 = arith.mulf %24, %38 : vector<8x128xf32>
    %50 = arith.addf %48, %49 : vector<8x128xf32>
    %51 = math.tanh %50 : vector<8x128xf32>
    %52 = arith.mulf %47, %51 : vector<8x128xf32>
    %c1_i32 = arith.constant 1 : i32
    %c8_i32_25 = arith.constant 8 : i32
    %53 = arith.muli %c1_i32, %c8_i32_25 : i32
    %54 = tpu.assume_multiple %53, 8 : i32
    %55 = arith.index_cast %54 : i32 to index
    %c0_26 = arith.constant 0 : index
    %56 = vector.load %arg6[%55, %c0_26] : memref<64x512xf32, #tpu.memory_space<vmem>>, vector<8x512xf32>
    %57 = vector.extract_strided_slice %56 {offsets = [0, 0], sizes = [8, 128], strides = [1, 1]} : vector<8x512xf32> to vector<8x128xf32>
    %c0_27 = arith.constant 0 : index
    %c0_28 = arith.constant 0 : index
    %58 = vector.load %arg2[%c0_27, %c0_28] : memref<128x512xf32, #tpu.memory_space<vmem>>, vector<128x128xf32>
    %cst_29 = arith.constant dense<0.000000e+00> : vector<8x128xf32>
    %59 = tpu.matmul %52, %58, %cst_29 {dimension_numbers = #tpu.dot_dimension_numbers<[1], [0], [0], [1], [0, 0, 1, 1], [], []>} : vector<8x128xf32>, vector<128x128xf32>, vector<8x128xf32> -> vector<8x128xf32>
    %60 = arith.addf %57, %59 : vector<8x128xf32>
    %61 = arith.negf %60 : vector<8x128xf32>
    %62 = math.exp %61 : vector<8x128xf32>
    %cst_30 = arith.constant 1.000000e+00 : f32
    %63 = vector.broadcast %cst_30 : f32 to vector<8x128xf32>
    %64 = arith.addf %63, %62 : vector<8x128xf32>
    %65 = arith.divf %63, %64 : vector<8x128xf32>
    %66 = vector.extract_strided_slice %56 {offsets = [0, 128], sizes = [8, 128], strides = [1, 1]} : vector<8x512xf32> to vector<8x128xf32>
    %c0_31 = arith.constant 0 : index
    %c128_32 = arith.constant 128 : index
    %67 = vector.load %arg2[%c0_31, %c128_32] : memref<128x512xf32, #tpu.memory_space<vmem>>, vector<128x128xf32>
    %cst_33 = arith.constant dense<0.000000e+00> : vector<8x128xf32>
    %68 = tpu.matmul %52, %67, %cst_33 {dimension_numbers = #tpu.dot_dimension_numbers<[1], [0], [0], [1], [0, 0, 1, 1], [], []>} : vector<8x128xf32>, vector<128x128xf32>, vector<8x128xf32> -> vector<8x128xf32>
    %69 = arith.addf %66, %68 : vector<8x128xf32>
    %70 = arith.negf %69 : vector<8x128xf32>
    %71 = math.exp %70 : vector<8x128xf32>
    %cst_34 = arith.constant 1.000000e+00 : f32
    %72 = vector.broadcast %cst_34 : f32 to vector<8x128xf32>
    %73 = arith.addf %72, %71 : vector<8x128xf32>
    %74 = arith.divf %72, %73 : vector<8x128xf32>
    %75 = vector.extract_strided_slice %56 {offsets = [0, 256], sizes = [8, 128], strides = [1, 1]} : vector<8x512xf32> to vector<8x128xf32>
    %c0_35 = arith.constant 0 : index
    %c256_36 = arith.constant 256 : index
    %76 = vector.load %arg2[%c0_35, %c256_36] : memref<128x512xf32, #tpu.memory_space<vmem>>, vector<128x128xf32>
    %cst_37 = arith.constant dense<0.000000e+00> : vector<8x128xf32>
    %77 = tpu.matmul %52, %76, %cst_37 {dimension_numbers = #tpu.dot_dimension_numbers<[1], [0], [0], [1], [0, 0, 1, 1], [], []>} : vector<8x128xf32>, vector<128x128xf32>, vector<8x128xf32> -> vector<8x128xf32>
    %78 = arith.addf %75, %77 : vector<8x128xf32>
    %79 = math.tanh %78 : vector<8x128xf32>
    %80 = vector.extract_strided_slice %56 {offsets = [0, 384], sizes = [8, 128], strides = [1, 1]} : vector<8x512xf32> to vector<8x128xf32>
    %c0_38 = arith.constant 0 : index
    %c384_39 = arith.constant 384 : index
    %81 = vector.load %arg2[%c0_38, %c384_39] : memref<128x512xf32, #tpu.memory_space<vmem>>, vector<128x128xf32>
    %cst_40 = arith.constant dense<0.000000e+00> : vector<8x128xf32>
    %82 = tpu.matmul %52, %81, %cst_40 {dimension_numbers = #tpu.dot_dimension_numbers<[1], [0], [0], [1], [0, 0, 1, 1], [], []>} : vector<8x128xf32>, vector<128x128xf32>, vector<8x128xf32> -> vector<8x128xf32>
    %83 = arith.addf %80, %82 : vector<8x128xf32>
    %84 = arith.negf %83 : vector<8x128xf32>
    %85 = math.exp %84 : vector<8x128xf32>
    %cst_41 = arith.constant 1.000000e+00 : f32
    %86 = vector.broadcast %cst_41 : f32 to vector<8x128xf32>
    %87 = arith.addf %86, %85 : vector<8x128xf32>
    %88 = arith.divf %86, %87 : vector<8x128xf32>
    %89 = arith.mulf %74, %50 : vector<8x128xf32>
    %90 = arith.mulf %65, %79 : vector<8x128xf32>
    %91 = arith.addf %89, %90 : vector<8x128xf32>
    %92 = math.tanh %91 : vector<8x128xf32>
    %93 = arith.mulf %88, %92 : vector<8x128xf32>
    %c2_i32 = arith.constant 2 : i32
    %c8_i32_42 = arith.constant 8 : i32
    %94 = arith.muli %c2_i32, %c8_i32_42 : i32
    %95 = tpu.assume_multiple %94, 8 : i32
    %96 = arith.index_cast %95 : i32 to index
    %c0_43 = arith.constant 0 : index
    %97 = vector.load %arg6[%96, %c0_43] : memref<64x512xf32, #tpu.memory_space<vmem>>, vector<8x512xf32>
    %98 = vector.extract_strided_slice %97 {offsets = [0, 0], sizes = [8, 128], strides = [1, 1]} : vector<8x512xf32> to vector<8x128xf32>
    %c0_44 = arith.constant 0 : index
    %c0_45 = arith.constant 0 : index
    %99 = vector.load %arg2[%c0_44, %c0_45] : memref<128x512xf32, #tpu.memory_space<vmem>>, vector<128x128xf32>
    %cst_46 = arith.constant dense<0.000000e+00> : vector<8x128xf32>
    %100 = tpu.matmul %93, %99, %cst_46 {dimension_numbers = #tpu.dot_dimension_numbers<[1], [0], [0], [1], [0, 0, 1, 1], [], []>} : vector<8x128xf32>, vector<128x128xf32>, vector<8x128xf32> -> vector<8x128xf32>
    %101 = arith.addf %98, %100 : vector<8x128xf32>
    %102 = arith.negf %101 : vector<8x128xf32>
    %103 = math.exp %102 : vector<8x128xf32>
    %cst_47 = arith.constant 1.000000e+00 : f32
    %104 = vector.broadcast %cst_47 : f32 to vector<8x128xf32>
    %105 = arith.addf %104, %103 : vector<8x128xf32>
    %106 = arith.divf %104, %105 : vector<8x128xf32>
    %107 = vector.extract_strided_slice %97 {offsets = [0, 128], sizes = [8, 128], strides = [1, 1]} : vector<8x512xf32> to vector<8x128xf32>
    %c0_48 = arith.constant 0 : index
    %c128_49 = arith.constant 128 : index
    %108 = vector.load %arg2[%c0_48, %c128_49] : memref<128x512xf32, #tpu.memory_space<vmem>>, vector<128x128xf32>
    %cst_50 = arith.constant dense<0.000000e+00> : vector<8x128xf32>
    %109 = tpu.matmul %93, %108, %cst_50 {dimension_numbers = #tpu.dot_dimension_numbers<[1], [0], [0], [1], [0, 0, 1, 1], [], []>} : vector<8x128xf32>, vector<128x128xf32>, vector<8x128xf32> -> vector<8x128xf32>
    %110 = arith.addf %107, %109 : vector<8x128xf32>
    %111 = arith.negf %110 : vector<8x128xf32>
    %112 = math.exp %111 : vector<8x128xf32>
    %cst_51 = arith.constant 1.000000e+00 : f32
    %113 = vector.broadcast %cst_51 : f32 to vector<8x128xf32>
    %114 = arith.addf %113, %112 : vector<8x128xf32>
    %115 = arith.divf %113, %114 : vector<8x128xf32>
    %116 = vector.extract_strided_slice %97 {offsets = [0, 256], sizes = [8, 128], strides = [1, 1]} : vector<8x512xf32> to vector<8x128xf32>
    %c0_52 = arith.constant 0 : index
    %c256_53 = arith.constant 256 : index
    %117 = vector.load %arg2[%c0_52, %c256_53] : memref<128x512xf32, #tpu.memory_space<vmem>>, vector<128x128xf32>
    %cst_54 = arith.constant dense<0.000000e+00> : vector<8x128xf32>
    %118 = tpu.matmul %93, %117, %cst_54 {dimension_numbers = #tpu.dot_dimension_numbers<[1], [0], [0], [1], [0, 0, 1, 1], [], []>} : vector<8x128xf32>, vector<128x128xf32>, vector<8x128xf32> -> vector<8x128xf32>
    %119 = arith.addf %116, %118 : vector<8x128xf32>
    %120 = math.tanh %119 : vector<8x128xf32>
    %121 = vector.extract_strided_slice %97 {offsets = [0, 384], sizes = [8, 128], strides = [1, 1]} : vector<8x512xf32> to vector<8x128xf32>
    %c0_55 = arith.constant 0 : index
    %c384_56 = arith.constant 384 : index
    %122 = vector.load %arg2[%c0_55, %c384_56] : memref<128x512xf32, #tpu.memory_space<vmem>>, vector<128x128xf32>
    %cst_57 = arith.constant dense<0.000000e+00> : vector<8x128xf32>
    %123 = tpu.matmul %93, %122, %cst_57 {dimension_numbers = #tpu.dot_dimension_numbers<[1], [0], [0], [1], [0, 0, 1, 1], [], []>} : vector<8x128xf32>, vector<128x128xf32>, vector<8x128xf32> -> vector<8x128xf32>
    %124 = arith.addf %121, %123 : vector<8x128xf32>
    %125 = arith.negf %124 : vector<8x128xf32>
    %126 = math.exp %125 : vector<8x128xf32>
    %cst_58 = arith.constant 1.000000e+00 : f32
    %127 = vector.broadcast %cst_58 : f32 to vector<8x128xf32>
    %128 = arith.addf %127, %126 : vector<8x128xf32>
    %129 = arith.divf %127, %128 : vector<8x128xf32>
    %130 = arith.mulf %115, %91 : vector<8x128xf32>
    %131 = arith.mulf %106, %120 : vector<8x128xf32>
    %132 = arith.addf %130, %131 : vector<8x128xf32>
    %133 = math.tanh %132 : vector<8x128xf32>
    %134 = arith.mulf %129, %133 : vector<8x128xf32>
    %c3_i32 = arith.constant 3 : i32
    %c8_i32_59 = arith.constant 8 : i32
    %135 = arith.muli %c3_i32, %c8_i32_59 : i32
    %136 = tpu.assume_multiple %135, 8 : i32
    %137 = arith.index_cast %136 : i32 to index
    %c0_60 = arith.constant 0 : index
    %138 = vector.load %arg6[%137, %c0_60] : memref<64x512xf32, #tpu.memory_space<vmem>>, vector<8x512xf32>
    %139 = vector.extract_strided_slice %138 {offsets = [0, 0], sizes = [8, 128], strides = [1, 1]} : vector<8x512xf32> to vector<8x128xf32>
    %c0_61 = arith.constant 0 : index
    %c0_62 = arith.constant 0 : index
    %140 = vector.load %arg2[%c0_61, %c0_62] : memref<128x512xf32, #tpu.memory_space<vmem>>, vector<128x128xf32>
    %cst_63 = arith.constant dense<0.000000e+00> : vector<8x128xf32>
    %141 = tpu.matmul %134, %140, %cst_63 {dimension_numbers = #tpu.dot_dimension_numbers<[1], [0], [0], [1], [0, 0, 1, 1], [], []>} : vector<8x128xf32>, vector<128x128xf32>, vector<8x128xf32> -> vector<8x128xf32>
    %142 = arith.addf %139, %141 : vector<8x128xf32>
    %143 = arith.negf %142 : vector<8x128xf32>
    %144 = math.exp %143 : vector<8x128xf32>
    %cst_64 = arith.constant 1.000000e+00 : f32
    %145 = vector.broadcast %cst_64 : f32 to vector<8x128xf32>
    %146 = arith.addf %145, %144 : vector<8x128xf32>
    %147 = arith.divf %145, %146 : vector<8x128xf32>
    %148 = vector.extract_strided_slice %138 {offsets = [0, 128], sizes = [8, 128], strides = [1, 1]} : vector<8x512xf32> to vector<8x128xf32>
    %c0_65 = arith.constant 0 : index
    %c128_66 = arith.constant 128 : index
    %149 = vector.load %arg2[%c0_65, %c128_66] : memref<128x512xf32, #tpu.memory_space<vmem>>, vector<128x128xf32>
    %cst_67 = arith.constant dense<0.000000e+00> : vector<8x128xf32>
    %150 = tpu.matmul %134, %149, %cst_67 {dimension_numbers = #tpu.dot_dimension_numbers<[1], [0], [0], [1], [0, 0, 1, 1], [], []>} : vector<8x128xf32>, vector<128x128xf32>, vector<8x128xf32> -> vector<8x128xf32>
    %151 = arith.addf %148, %150 : vector<8x128xf32>
    %152 = arith.negf %151 : vector<8x128xf32>
    %153 = math.exp %152 : vector<8x128xf32>
    %cst_68 = arith.constant 1.000000e+00 : f32
    %154 = vector.broadcast %cst_68 : f32 to vector<8x128xf32>
    %155 = arith.addf %154, %153 : vector<8x128xf32>
    %156 = arith.divf %154, %155 : vector<8x128xf32>
    %157 = vector.extract_strided_slice %138 {offsets = [0, 256], sizes = [8, 128], strides = [1, 1]} : vector<8x512xf32> to vector<8x128xf32>
    %c0_69 = arith.constant 0 : index
    %c256_70 = arith.constant 256 : index
    %158 = vector.load %arg2[%c0_69, %c256_70] : memref<128x512xf32, #tpu.memory_space<vmem>>, vector<128x128xf32>
    %cst_71 = arith.constant dense<0.000000e+00> : vector<8x128xf32>
    %159 = tpu.matmul %134, %158, %cst_71 {dimension_numbers = #tpu.dot_dimension_numbers<[1], [0], [0], [1], [0, 0, 1, 1], [], []>} : vector<8x128xf32>, vector<128x128xf32>, vector<8x128xf32> -> vector<8x128xf32>
    %160 = arith.addf %157, %159 : vector<8x128xf32>
    %161 = math.tanh %160 : vector<8x128xf32>
    %162 = vector.extract_strided_slice %138 {offsets = [0, 384], sizes = [8, 128], strides = [1, 1]} : vector<8x512xf32> to vector<8x128xf32>
    %c0_72 = arith.constant 0 : index
    %c384_73 = arith.constant 384 : index
    %163 = vector.load %arg2[%c0_72, %c384_73] : memref<128x512xf32, #tpu.memory_space<vmem>>, vector<128x128xf32>
    %cst_74 = arith.constant dense<0.000000e+00> : vector<8x128xf32>
    %164 = tpu.matmul %134, %163, %cst_74 {dimension_numbers = #tpu.dot_dimension_numbers<[1], [0], [0], [1], [0, 0, 1, 1], [], []>} : vector<8x128xf32>, vector<128x128xf32>, vector<8x128xf32> -> vector<8x128xf32>
    %165 = arith.addf %162, %164 : vector<8x128xf32>
    %166 = arith.negf %165 : vector<8x128xf32>
    %167 = math.exp %166 : vector<8x128xf32>
    %cst_75 = arith.constant 1.000000e+00 : f32
    %168 = vector.broadcast %cst_75 : f32 to vector<8x128xf32>
    %169 = arith.addf %168, %167 : vector<8x128xf32>
    %170 = arith.divf %168, %169 : vector<8x128xf32>
    %171 = arith.mulf %156, %132 : vector<8x128xf32>
    %172 = arith.mulf %147, %161 : vector<8x128xf32>
    %173 = arith.addf %171, %172 : vector<8x128xf32>
    %174 = math.tanh %173 : vector<8x128xf32>
    %175 = arith.mulf %170, %174 : vector<8x128xf32>
    %c4_i32 = arith.constant 4 : i32
    %c8_i32_76 = arith.constant 8 : i32
    %176 = arith.muli %c4_i32, %c8_i32_76 : i32
    %177 = tpu.assume_multiple %176, 8 : i32
    %178 = arith.index_cast %177 : i32 to index
    %c0_77 = arith.constant 0 : index
    %179 = vector.load %arg6[%178, %c0_77] : memref<64x512xf32, #tpu.memory_space<vmem>>, vector<8x512xf32>
    %180 = vector.extract_strided_slice %179 {offsets = [0, 0], sizes = [8, 128], strides = [1, 1]} : vector<8x512xf32> to vector<8x128xf32>
    %c0_78 = arith.constant 0 : index
    %c0_79 = arith.constant 0 : index
    %181 = vector.load %arg2[%c0_78, %c0_79] : memref<128x512xf32, #tpu.memory_space<vmem>>, vector<128x128xf32>
    %cst_80 = arith.constant dense<0.000000e+00> : vector<8x128xf32>
    %182 = tpu.matmul %175, %181, %cst_80 {dimension_numbers = #tpu.dot_dimension_numbers<[1], [0], [0], [1], [0, 0, 1, 1], [], []>} : vector<8x128xf32>, vector<128x128xf32>, vector<8x128xf32> -> vector<8x128xf32>
    %183 = arith.addf %180, %182 : vector<8x128xf32>
    %184 = arith.negf %183 : vector<8x128xf32>
    %185 = math.exp %184 : vector<8x128xf32>
    %cst_81 = arith.constant 1.000000e+00 : f32
    %186 = vector.broadcast %cst_81 : f32 to vector<8x128xf32>
    %187 = arith.addf %186, %185 : vector<8x128xf32>
    %188 = arith.divf %186, %187 : vector<8x128xf32>
    %189 = vector.extract_strided_slice %179 {offsets = [0, 128], sizes = [8, 128], strides = [1, 1]} : vector<8x512xf32> to vector<8x128xf32>
    %c0_82 = arith.constant 0 : index
    %c128_83 = arith.constant 128 : index
    %190 = vector.load %arg2[%c0_82, %c128_83] : memref<128x512xf32, #tpu.memory_space<vmem>>, vector<128x128xf32>
    %cst_84 = arith.constant dense<0.000000e+00> : vector<8x128xf32>
    %191 = tpu.matmul %175, %190, %cst_84 {dimension_numbers = #tpu.dot_dimension_numbers<[1], [0], [0], [1], [0, 0, 1, 1], [], []>} : vector<8x128xf32>, vector<128x128xf32>, vector<8x128xf32> -> vector<8x128xf32>
    %192 = arith.addf %189, %191 : vector<8x128xf32>
    %193 = arith.negf %192 : vector<8x128xf32>
    %194 = math.exp %193 : vector<8x128xf32>
    %cst_85 = arith.constant 1.000000e+00 : f32
    %195 = vector.broadcast %cst_85 : f32 to vector<8x128xf32>
    %196 = arith.addf %195, %194 : vector<8x128xf32>
    %197 = arith.divf %195, %196 : vector<8x128xf32>
    %198 = vector.extract_strided_slice %179 {offsets = [0, 256], sizes = [8, 128], strides = [1, 1]} : vector<8x512xf32> to vector<8x128xf32>
    %c0_86 = arith.constant 0 : index
    %c256_87 = arith.constant 256 : index
    %199 = vector.load %arg2[%c0_86, %c256_87] : memref<128x512xf32, #tpu.memory_space<vmem>>, vector<128x128xf32>
    %cst_88 = arith.constant dense<0.000000e+00> : vector<8x128xf32>
    %200 = tpu.matmul %175, %199, %cst_88 {dimension_numbers = #tpu.dot_dimension_numbers<[1], [0], [0], [1], [0, 0, 1, 1], [], []>} : vector<8x128xf32>, vector<128x128xf32>, vector<8x128xf32> -> vector<8x128xf32>
    %201 = arith.addf %198, %200 : vector<8x128xf32>
    %202 = math.tanh %201 : vector<8x128xf32>
    %203 = vector.extract_strided_slice %179 {offsets = [0, 384], sizes = [8, 128], strides = [1, 1]} : vector<8x512xf32> to vector<8x128xf32>
    %c0_89 = arith.constant 0 : index
    %c384_90 = arith.constant 384 : index
    %204 = vector.load %arg2[%c0_89, %c384_90] : memref<128x512xf32, #tpu.memory_space<vmem>>, vector<128x128xf32>
    %cst_91 = arith.constant dense<0.000000e+00> : vector<8x128xf32>
    %205 = tpu.matmul %175, %204, %cst_91 {dimension_numbers = #tpu.dot_dimension_numbers<[1], [0], [0], [1], [0, 0, 1, 1], [], []>} : vector<8x128xf32>, vector<128x128xf32>, vector<8x128xf32> -> vector<8x128xf32>
    %206 = arith.addf %203, %205 : vector<8x128xf32>
    %207 = arith.negf %206 : vector<8x128xf32>
    %208 = math.exp %207 : vector<8x128xf32>
    %cst_92 = arith.constant 1.000000e+00 : f32
    %209 = vector.broadcast %cst_92 : f32 to vector<8x128xf32>
    %210 = arith.addf %209, %208 : vector<8x128xf32>
    %211 = arith.divf %209, %210 : vector<8x128xf32>
    %212 = arith.mulf %197, %173 : vector<8x128xf32>
    %213 = arith.mulf %188, %202 : vector<8x128xf32>
    %214 = arith.addf %212, %213 : vector<8x128xf32>
    %215 = math.tanh %214 : vector<8x128xf32>
    %216 = arith.mulf %211, %215 : vector<8x128xf32>
    %c5_i32 = arith.constant 5 : i32
    %c8_i32_93 = arith.constant 8 : i32
    %217 = arith.muli %c5_i32, %c8_i32_93 : i32
    %218 = tpu.assume_multiple %217, 8 : i32
    %219 = arith.index_cast %218 : i32 to index
    %c0_94 = arith.constant 0 : index
    %220 = vector.load %arg6[%219, %c0_94] : memref<64x512xf32, #tpu.memory_space<vmem>>, vector<8x512xf32>
    %221 = vector.extract_strided_slice %220 {offsets = [0, 0], sizes = [8, 128], strides = [1, 1]} : vector<8x512xf32> to vector<8x128xf32>
    %c0_95 = arith.constant 0 : index
    %c0_96 = arith.constant 0 : index
    %222 = vector.load %arg2[%c0_95, %c0_96] : memref<128x512xf32, #tpu.memory_space<vmem>>, vector<128x128xf32>
    %cst_97 = arith.constant dense<0.000000e+00> : vector<8x128xf32>
    %223 = tpu.matmul %216, %222, %cst_97 {dimension_numbers = #tpu.dot_dimension_numbers<[1], [0], [0], [1], [0, 0, 1, 1], [], []>} : vector<8x128xf32>, vector<128x128xf32>, vector<8x128xf32> -> vector<8x128xf32>
    %224 = arith.addf %221, %223 : vector<8x128xf32>
    %225 = arith.negf %224 : vector<8x128xf32>
    %226 = math.exp %225 : vector<8x128xf32>
    %cst_98 = arith.constant 1.000000e+00 : f32
    %227 = vector.broadcast %cst_98 : f32 to vector<8x128xf32>
    %228 = arith.addf %227, %226 : vector<8x128xf32>
    %229 = arith.divf %227, %228 : vector<8x128xf32>
    %230 = vector.extract_strided_slice %220 {offsets = [0, 128], sizes = [8, 128], strides = [1, 1]} : vector<8x512xf32> to vector<8x128xf32>
    %c0_99 = arith.constant 0 : index
    %c128_100 = arith.constant 128 : index
    %231 = vector.load %arg2[%c0_99, %c128_100] : memref<128x512xf32, #tpu.memory_space<vmem>>, vector<128x128xf32>
    %cst_101 = arith.constant dense<0.000000e+00> : vector<8x128xf32>
    %232 = tpu.matmul %216, %231, %cst_101 {dimension_numbers = #tpu.dot_dimension_numbers<[1], [0], [0], [1], [0, 0, 1, 1], [], []>} : vector<8x128xf32>, vector<128x128xf32>, vector<8x128xf32> -> vector<8x128xf32>
    %233 = arith.addf %230, %232 : vector<8x128xf32>
    %234 = arith.negf %233 : vector<8x128xf32>
    %235 = math.exp %234 : vector<8x128xf32>
    %cst_102 = arith.constant 1.000000e+00 : f32
    %236 = vector.broadcast %cst_102 : f32 to vector<8x128xf32>
    %237 = arith.addf %236, %235 : vector<8x128xf32>
    %238 = arith.divf %236, %237 : vector<8x128xf32>
    %239 = vector.extract_strided_slice %220 {offsets = [0, 256], sizes = [8, 128], strides = [1, 1]} : vector<8x512xf32> to vector<8x128xf32>
    %c0_103 = arith.constant 0 : index
    %c256_104 = arith.constant 256 : index
    %240 = vector.load %arg2[%c0_103, %c256_104] : memref<128x512xf32, #tpu.memory_space<vmem>>, vector<128x128xf32>
    %cst_105 = arith.constant dense<0.000000e+00> : vector<8x128xf32>
    %241 = tpu.matmul %216, %240, %cst_105 {dimension_numbers = #tpu.dot_dimension_numbers<[1], [0], [0], [1], [0, 0, 1, 1], [], []>} : vector<8x128xf32>, vector<128x128xf32>, vector<8x128xf32> -> vector<8x128xf32>
    %242 = arith.addf %239, %241 : vector<8x128xf32>
    %243 = math.tanh %242 : vector<8x128xf32>
    %244 = vector.extract_strided_slice %220 {offsets = [0, 384], sizes = [8, 128], strides = [1, 1]} : vector<8x512xf32> to vector<8x128xf32>
    %c0_106 = arith.constant 0 : index
    %c384_107 = arith.constant 384 : index
    %245 = vector.load %arg2[%c0_106, %c384_107] : memref<128x512xf32, #tpu.memory_space<vmem>>, vector<128x128xf32>
    %cst_108 = arith.constant dense<0.000000e+00> : vector<8x128xf32>
    %246 = tpu.matmul %216, %245, %cst_108 {dimension_numbers = #tpu.dot_dimension_numbers<[1], [0], [0], [1], [0, 0, 1, 1], [], []>} : vector<8x128xf32>, vector<128x128xf32>, vector<8x128xf32> -> vector<8x128xf32>
    %247 = arith.addf %244, %246 : vector<8x128xf32>
    %248 = arith.negf %247 : vector<8x128xf32>
    %249 = math.exp %248 : vector<8x128xf32>
    %cst_109 = arith.constant 1.000000e+00 : f32
    %250 = vector.broadcast %cst_109 : f32 to vector<8x128xf32>
    %251 = arith.addf %250, %249 : vector<8x128xf32>
    %252 = arith.divf %250, %251 : vector<8x128xf32>
    %253 = arith.mulf %238, %214 : vector<8x128xf32>
    %254 = arith.mulf %229, %243 : vector<8x128xf32>
    %255 = arith.addf %253, %254 : vector<8x128xf32>
    %256 = math.tanh %255 : vector<8x128xf32>
    %257 = arith.mulf %252, %256 : vector<8x128xf32>
    %c6_i32 = arith.constant 6 : i32
    %c8_i32_110 = arith.constant 8 : i32
    %258 = arith.muli %c6_i32, %c8_i32_110 : i32
    %259 = tpu.assume_multiple %258, 8 : i32
    %260 = arith.index_cast %259 : i32 to index
    %c0_111 = arith.constant 0 : index
    %261 = vector.load %arg6[%260, %c0_111] : memref<64x512xf32, #tpu.memory_space<vmem>>, vector<8x512xf32>
    %262 = vector.extract_strided_slice %261 {offsets = [0, 0], sizes = [8, 128], strides = [1, 1]} : vector<8x512xf32> to vector<8x128xf32>
    %c0_112 = arith.constant 0 : index
    %c0_113 = arith.constant 0 : index
    %263 = vector.load %arg2[%c0_112, %c0_113] : memref<128x512xf32, #tpu.memory_space<vmem>>, vector<128x128xf32>
    %cst_114 = arith.constant dense<0.000000e+00> : vector<8x128xf32>
    %264 = tpu.matmul %257, %263, %cst_114 {dimension_numbers = #tpu.dot_dimension_numbers<[1], [0], [0], [1], [0, 0, 1, 1], [], []>} : vector<8x128xf32>, vector<128x128xf32>, vector<8x128xf32> -> vector<8x128xf32>
    %265 = arith.addf %262, %264 : vector<8x128xf32>
    %266 = arith.negf %265 : vector<8x128xf32>
    %267 = math.exp %266 : vector<8x128xf32>
    %cst_115 = arith.constant 1.000000e+00 : f32
    %268 = vector.broadcast %cst_115 : f32 to vector<8x128xf32>
    %269 = arith.addf %268, %267 : vector<8x128xf32>
    %270 = arith.divf %268, %269 : vector<8x128xf32>
    %271 = vector.extract_strided_slice %261 {offsets = [0, 128], sizes = [8, 128], strides = [1, 1]} : vector<8x512xf32> to vector<8x128xf32>
    %c0_116 = arith.constant 0 : index
    %c128_117 = arith.constant 128 : index
    %272 = vector.load %arg2[%c0_116, %c128_117] : memref<128x512xf32, #tpu.memory_space<vmem>>, vector<128x128xf32>
    %cst_118 = arith.constant dense<0.000000e+00> : vector<8x128xf32>
    %273 = tpu.matmul %257, %272, %cst_118 {dimension_numbers = #tpu.dot_dimension_numbers<[1], [0], [0], [1], [0, 0, 1, 1], [], []>} : vector<8x128xf32>, vector<128x128xf32>, vector<8x128xf32> -> vector<8x128xf32>
    %274 = arith.addf %271, %273 : vector<8x128xf32>
    %275 = arith.negf %274 : vector<8x128xf32>
    %276 = math.exp %275 : vector<8x128xf32>
    %cst_119 = arith.constant 1.000000e+00 : f32
    %277 = vector.broadcast %cst_119 : f32 to vector<8x128xf32>
    %278 = arith.addf %277, %276 : vector<8x128xf32>
    %279 = arith.divf %277, %278 : vector<8x128xf32>
    %280 = vector.extract_strided_slice %261 {offsets = [0, 256], sizes = [8, 128], strides = [1, 1]} : vector<8x512xf32> to vector<8x128xf32>
    %c0_120 = arith.constant 0 : index
    %c256_121 = arith.constant 256 : index
    %281 = vector.load %arg2[%c0_120, %c256_121] : memref<128x512xf32, #tpu.memory_space<vmem>>, vector<128x128xf32>
    %cst_122 = arith.constant dense<0.000000e+00> : vector<8x128xf32>
    %282 = tpu.matmul %257, %281, %cst_122 {dimension_numbers = #tpu.dot_dimension_numbers<[1], [0], [0], [1], [0, 0, 1, 1], [], []>} : vector<8x128xf32>, vector<128x128xf32>, vector<8x128xf32> -> vector<8x128xf32>
    %283 = arith.addf %280, %282 : vector<8x128xf32>
    %284 = math.tanh %283 : vector<8x128xf32>
    %285 = vector.extract_strided_slice %261 {offsets = [0, 384], sizes = [8, 128], strides = [1, 1]} : vector<8x512xf32> to vector<8x128xf32>
    %c0_123 = arith.constant 0 : index
    %c384_124 = arith.constant 384 : index
    %286 = vector.load %arg2[%c0_123, %c384_124] : memref<128x512xf32, #tpu.memory_space<vmem>>, vector<128x128xf32>
    %cst_125 = arith.constant dense<0.000000e+00> : vector<8x128xf32>
    %287 = tpu.matmul %257, %286, %cst_125 {dimension_numbers = #tpu.dot_dimension_numbers<[1], [0], [0], [1], [0, 0, 1, 1], [], []>} : vector<8x128xf32>, vector<128x128xf32>, vector<8x128xf32> -> vector<8x128xf32>
    %288 = arith.addf %285, %287 : vector<8x128xf32>
    %289 = arith.negf %288 : vector<8x128xf32>
    %290 = math.exp %289 : vector<8x128xf32>
    %cst_126 = arith.constant 1.000000e+00 : f32
    %291 = vector.broadcast %cst_126 : f32 to vector<8x128xf32>
    %292 = arith.addf %291, %290 : vector<8x128xf32>
    %293 = arith.divf %291, %292 : vector<8x128xf32>
    %294 = arith.mulf %279, %255 : vector<8x128xf32>
    %295 = arith.mulf %270, %284 : vector<8x128xf32>
    %296 = arith.addf %294, %295 : vector<8x128xf32>
    %297 = math.tanh %296 : vector<8x128xf32>
    %298 = arith.mulf %293, %297 : vector<8x128xf32>
    %c7_i32 = arith.constant 7 : i32
    %c8_i32_127 = arith.constant 8 : i32
    %299 = arith.muli %c7_i32, %c8_i32_127 : i32
    %300 = tpu.assume_multiple %299, 8 : i32
    %301 = arith.index_cast %300 : i32 to index
    %c0_128 = arith.constant 0 : index
    %302 = vector.load %arg6[%301, %c0_128] : memref<64x512xf32, #tpu.memory_space<vmem>>, vector<8x512xf32>
    %303 = vector.extract_strided_slice %302 {offsets = [0, 0], sizes = [8, 128], strides = [1, 1]} : vector<8x512xf32> to vector<8x128xf32>
    %c0_129 = arith.constant 0 : index
    %c0_130 = arith.constant 0 : index
    %304 = vector.load %arg2[%c0_129, %c0_130] : memref<128x512xf32, #tpu.memory_space<vmem>>, vector<128x128xf32>
    %cst_131 = arith.constant dense<0.000000e+00> : vector<8x128xf32>
    %305 = tpu.matmul %298, %304, %cst_131 {dimension_numbers = #tpu.dot_dimension_numbers<[1], [0], [0], [1], [0, 0, 1, 1], [], []>} : vector<8x128xf32>, vector<128x128xf32>, vector<8x128xf32> -> vector<8x128xf32>
    %306 = arith.addf %303, %305 : vector<8x128xf32>
    %307 = arith.negf %306 : vector<8x128xf32>
    %308 = math.exp %307 : vector<8x128xf32>
    %cst_132 = arith.constant 1.000000e+00 : f32
    %309 = vector.broadcast %cst_132 : f32 to vector<8x128xf32>
    %310 = arith.addf %309, %308 : vector<8x128xf32>
    %311 = arith.divf %309, %310 : vector<8x128xf32>
    %312 = vector.extract_strided_slice %302 {offsets = [0, 128], sizes = [8, 128], strides = [1, 1]} : vector<8x512xf32> to vector<8x128xf32>
    %c0_133 = arith.constant 0 : index
    %c128_134 = arith.constant 128 : index
    %313 = vector.load %arg2[%c0_133, %c128_134] : memref<128x512xf32, #tpu.memory_space<vmem>>, vector<128x128xf32>
    %cst_135 = arith.constant dense<0.000000e+00> : vector<8x128xf32>
    %314 = tpu.matmul %298, %313, %cst_135 {dimension_numbers = #tpu.dot_dimension_numbers<[1], [0], [0], [1], [0, 0, 1, 1], [], []>} : vector<8x128xf32>, vector<128x128xf32>, vector<8x128xf32> -> vector<8x128xf32>
    %315 = arith.addf %312, %314 : vector<8x128xf32>
    %316 = arith.negf %315 : vector<8x128xf32>
    %317 = math.exp %316 : vector<8x128xf32>
    %cst_136 = arith.constant 1.000000e+00 : f32
    %318 = vector.broadcast %cst_136 : f32 to vector<8x128xf32>
    %319 = arith.addf %318, %317 : vector<8x128xf32>
    %320 = arith.divf %318, %319 : vector<8x128xf32>
    %321 = vector.extract_strided_slice %302 {offsets = [0, 256], sizes = [8, 128], strides = [1, 1]} : vector<8x512xf32> to vector<8x128xf32>
    %c0_137 = arith.constant 0 : index
    %c256_138 = arith.constant 256 : index
    %322 = vector.load %arg2[%c0_137, %c256_138] : memref<128x512xf32, #tpu.memory_space<vmem>>, vector<128x128xf32>
    %cst_139 = arith.constant dense<0.000000e+00> : vector<8x128xf32>
    %323 = tpu.matmul %298, %322, %cst_139 {dimension_numbers = #tpu.dot_dimension_numbers<[1], [0], [0], [1], [0, 0, 1, 1], [], []>} : vector<8x128xf32>, vector<128x128xf32>, vector<8x128xf32> -> vector<8x128xf32>
    %324 = arith.addf %321, %323 : vector<8x128xf32>
    %325 = math.tanh %324 : vector<8x128xf32>
    %326 = vector.extract_strided_slice %302 {offsets = [0, 384], sizes = [8, 128], strides = [1, 1]} : vector<8x512xf32> to vector<8x128xf32>
    %c0_140 = arith.constant 0 : index
    %c384_141 = arith.constant 384 : index
    %327 = vector.load %arg2[%c0_140, %c384_141] : memref<128x512xf32, #tpu.memory_space<vmem>>, vector<128x128xf32>
    %cst_142 = arith.constant dense<0.000000e+00> : vector<8x128xf32>
    %328 = tpu.matmul %298, %327, %cst_142 {dimension_numbers = #tpu.dot_dimension_numbers<[1], [0], [0], [1], [0, 0, 1, 1], [], []>} : vector<8x128xf32>, vector<128x128xf32>, vector<8x128xf32> -> vector<8x128xf32>
    %329 = arith.addf %326, %328 : vector<8x128xf32>
    %330 = arith.negf %329 : vector<8x128xf32>
    %331 = math.exp %330 : vector<8x128xf32>
    %cst_143 = arith.constant 1.000000e+00 : f32
    %332 = vector.broadcast %cst_143 : f32 to vector<8x128xf32>
    %333 = arith.addf %332, %331 : vector<8x128xf32>
    %334 = arith.divf %332, %333 : vector<8x128xf32>
    %335 = arith.mulf %320, %296 : vector<8x128xf32>
    %336 = arith.mulf %311, %325 : vector<8x128xf32>
    %337 = arith.addf %335, %336 : vector<8x128xf32>
    %338 = math.tanh %337 : vector<8x128xf32>
    %339 = arith.mulf %334, %338 : vector<8x128xf32>
    %c8_i32_144 = arith.constant 8 : i32
    %c0_145 = arith.constant 0 : index
    %c0_146 = arith.constant 0 : index
    %340 = vector.load %arg3[%c0_145, %c0_146] : memref<128x128xf32, #tpu.memory_space<vmem>>, vector<128x128xf32>
    %cst_147 = arith.constant dense<0.000000e+00> : vector<8x128xf32>
    %341 = tpu.matmul %339, %340, %cst_147 {dimension_numbers = #tpu.dot_dimension_numbers<[1], [0], [0], [1], [0, 0, 1, 1], [], []>} : vector<8x128xf32>, vector<128x128xf32>, vector<8x128xf32> -> vector<8x128xf32>
    %342 = vector.broadcast %1 : vector<1x128xf32> to vector<8x128xf32>
    %343 = arith.addf %341, %342 : vector<8x128xf32>
    %cst_148 = arith.constant 0.000000e+00 : f32
    %344 = vector.broadcast %cst_148 : f32 to vector<8x128xf32>
    %345 = arith.maximumf %343, %344 : vector<8x128xf32>
    %346 = vector.broadcast %2 : vector<1x128xf32> to vector<8x128xf32>
    %347 = arith.mulf %345, %346 : vector<8x128xf32>
    %cst_149 = arith.constant dense<0.000000e+00> : vector<8xf32>
    %348 = vector.multi_reduction <add>, %347, %cst_149 [1] : vector<8x128xf32> to vector<8xf32>
    %349 = vector.shape_cast %348 : vector<8xf32> to vector<8x1xf32>
    %350 = vector.broadcast %349 : vector<8x1xf32> to vector<8x128xf32>
    %351 = vector.broadcast %3 : vector<1x128xf32> to vector<8x128xf32>
    %352 = arith.addf %350, %351 : vector<8x128xf32>
    %c0_150 = arith.constant 0 : index
    %c0_151 = arith.constant 0 : index
    %353 = vector.load %arg5[%c0_150, %c0_151] : memref<8x128xf32, #tpu.memory_space<vmem>>, vector<8x128xf32>
    tpu.vector_store %arg5[%c0_150, %c0_151], %352 {strides = array<i32>} : memref<8x128xf32, #tpu.memory_space<vmem>>, vector<8x128xf32>,
    return
  }
}

</mosaic_0001>

<bundles_post_ra>
// kernel: critic_forward.1
= control target key start
LH: loop header
LB: loop body
LE: loop exit
PB: predicated region body
PF: predicated region fallthrough
CT: control target
= control target key end

     0   :  { %10 = vsyncpa [#allocation4], 0  ;;  %s6866_s0 = inlined_call_operand.vmem [shape: f32[64,128], index: 0, kind: input, shape index: {}]   ;;  %s6867_s1 = inlined_call_operand.hbm [shape: f32[128,512], index: 1, kind: input, shape index: {}]   ;;  %s6868_s2 = inlined_call_operand.hbm [shape: f32[128,512], index: 2, kind: input, shape index: {}]   ;;  %s6869_s3 = inlined_call_operand.hbm [shape: f32[128,128], index: 3, kind: input, shape index: {}]   ;;  %s6870_s4 = inlined_call_operand.vmem [shape: f32[1,896], index: 4, kind: input, shape index: {}]   ;;  %s6871_s5 = inlined_call_operand.vmem [shape: f32[8,128], index: 5, kind: output, shape index: {}]  }
   0x1   :  { %11 = vsyncpa [#allocation6], 0  ;;  %s5930_s18 = smov [#allocation5]   ;;  %s5931_s20 = smov [#allocation3]  }
   0x2   :  { %s31_s19 = sshll.u32 %s5930_s18, 4  ;;  %s19_s21 = sshll.u32 %s5931_s20, 4  ;;  %s32_s19 = int_to_ptr.vmem [resolvable:$true] %s31_s19  ;;  %s5970_s21 = int_to_ptr.vmem [resolvable:$true] %s19_s21 }
   0x3   :  { %s5860_s24 = scalar_lea.hbm %s6868_s2, 8192 }
   0x4   :  { %p5861_p0 = scmp.ne.s32.totalorder %s6868_s2, %s5860_s24  ;;  %p5864_p1 = scmp.lt.u32.totalorder %s5860_s24, %s6868_s2 }
   0x6   :  { %p5866_p2 = pnand %p5864_p1, %p5861_p0 }
   0x8   :  { %5869 = shalt.err (!%p5866_p2)
}
   0x9   :  { %s5870_s29 = scalar_lea.vmem %s32_s19, 8192  ;;  %p5875_p4 = scmp.lt.s32.totalorder %s32_s19, %s32_s19 }
   0xa   :  { %p5871_p3 = scmp.ne.s32.totalorder %s32_s19, %s5870_s29  ;;  %p5876_p5 = scmp.lt.s32.totalorder %s5870_s29, %s5870_s29 }
   0xc   :  { %p5877_p6 = por %p5876_p5, %p5875_p4 }
   0xe   :  { %p5878_p7 = pnand %p5877_p6, %p5871_p3 }
  0x10   :  { %5881 = shalt.err (!%p5878_p7)
}
  0x11   :  { %s5932_s30 = smov 512   ;;  %s5933_s6 = smov 32  }
  0x12   :  { %37 = dma.hbm_to_vmem [thread:$0]  %s6868_s2, 8192, %s32_s19, [#allocation6], %s5932_s30, %s5932_s30, %s5933_s6  }
  0x13   :  { %s5882_s11 = scalar_lea.hbm %s6867_s1, 8192 }
  0x14   :  { %p5883_p8 = scmp.ne.s32.totalorder %s6867_s1, %s5882_s11  ;;  %p5886_p9 = scmp.lt.u32.totalorder %s5882_s11, %s6867_s1 }
  0x16   :  { %p5888_p10 = pnand %p5886_p9, %p5883_p8 }
  0x18   :  { %5891 = shalt.err (!%p5888_p10)
}
  0x19   :  { %s5892_s16 = scalar_lea.vmem %s5970_s21, 8192  ;;  %p5897_p12 = scmp.lt.s32.totalorder %s5970_s21, %s5970_s21 }
  0x1a   :  { %p5893_p11 = scmp.ne.s32.totalorder %s5970_s21, %s5892_s16  ;;  %p5898_p13 = scmp.lt.s32.totalorder %s5892_s16, %s5892_s16 }
  0x1c   :  { %p5899_p0 = por %p5898_p13, %p5897_p12 }
  0x1e   :  { %p5900_p1 = pnand %p5899_p0, %p5893_p11 }
  0x20   :  { %5903 = shalt.err (!%p5900_p1)
}
  0x21   :  { %25 = dma.hbm_to_vmem [thread:$0]  %s6867_s1, 8192, %s5970_s21, [#allocation4], %s5932_s30, %s5932_s30, %s5933_s6  }
  0x22   :  { %s5934_s18 = smov [#allocation7]   ;;  %s5904_s23 = scalar_lea.hbm %s6869_s3, 2048 }
  0x23   :  { %s43_s19 = sshll.u32 %s5934_s18, 4  ;;  %p5905_p2 = scmp.ne.s32.totalorder %s6869_s3, %s5904_s23  ;;  %s44_s19 = int_to_ptr.vmem [resolvable:$true] %s43_s19 }
  0x24   :  { %p5908_p3 = scmp.lt.u32.totalorder %s5904_s23, %s6869_s3 }
  0x26   :  { %p5910_p4 = pnand %p5908_p3, %p5905_p2 }
  0x28   :  { %5913 = shalt.err (!%p5910_p4)
}
  0x29   :  { %s5914_s28 = scalar_lea.vmem %s44_s19, 2048  ;;  %p5919_p6 = scmp.lt.s32.totalorder %s44_s19, %s44_s19 }
  0x2a   :  { %p5915_p5 = scmp.ne.s32.totalorder %s44_s19, %s5914_s28  ;;  %p5920_p7 = scmp.lt.s32.totalorder %s5914_s28, %s5914_s28 }
  0x2c   :  { %p5921_p8 = por %p5920_p7, %p5919_p6 }
  0x2e   :  { %p5922_p9 = pnand %p5921_p8, %p5915_p5 }
  0x30   :  { %5925 = shalt.err (!%p5922_p9)
}
  0x31   :  { %s5935_s1 = smov 128   ;;  %s5936_s21 = smov 8  }
  0x32   :  { %49 = dma.hbm_to_vmem [thread:$0]  %s6869_s3, 2048, %s44_s19, [#allocation6], %s5935_s1, %s5935_s1, %s5936_s21  }
  0x33   :  { %5926 = dma.done.wait [#allocation4], 8192  }
  0x34   :  { %5927 = vsyncadd [#allocation4], 4294959104 }
  0x35   :  { %5928 = dma.done.wait [#allocation6], 10240  }
  0x36   :  { %5929 = vsyncadd [#allocation6], 4294957056  ;;  %v6872_v0 = vmov 0.0   ;;  %v74_v1 = vld [vmem:[#allocation3 + $0x8] sm:$0xff]  ;;  %v76_v3 = vld [vmem:[#allocation3 + $0x18] sm:$0xff]  ;;  %vm5939_vm0 = vmmov 0  }
  0x37   :  { %222 = vmatprep.mubr.f32.mxu0 %v6872_v0  ;;  %335 = vmatprep.mubr.f32.mxu1 %v6872_v0  ;;  %v78_v2 = vld [vmem:[#allocation3 + $0x28] sm:$0xff]  ;;  %v80_v5 = vld [vmem:[#allocation3 + $0x38] sm:$0xff]  ;;  %v73_v6 = vld [vmem:[#allocation3] sm:$0xff] }
  0x38   :  { %v4866_v4 = vpack.c.bf16 %v78_v2, %v74_v1  ;;  %v77_v7 = vld [vmem:[#allocation3 + $0x20] sm:$0xff]  ;;  %v4898_v8 = vpack.c.bf16 %v80_v5, %v76_v3  ;;  %v75_v10 = vld [vmem:[#allocation3 + $0x10] sm:$0xff]  ;;  %v82_v12 = vld [vmem:[#allocation3 + $0x48] sm:$0xff] }
  0x39   :  { %v4868_v9 = vpack.c.bf16 %v77_v7, %v73_v6  ;;  %v79_v11 = vld [vmem:[#allocation3 + $0x30] sm:$0xff]  ;;  %v86_v14 = vld [vmem:[#allocation3 + $0x68] sm:$0xff]  ;;  %v84_v15 = vld [vmem:[#allocation3 + $0x58] sm:$0xff] }
  0x3a   :  { %4867 = vmatprep.subr.bf16.mxu0 %v4866_v4  ;;  %v4900_v13 = vpack.c.bf16 %v79_v11, %v75_v10  ;;  %v88_v16 = vld [vmem:[#allocation3 + $0x78] sm:$0xff]  ;;  %4899 = vmatprep.subr.bf16.mxu1 %v4898_v8  ;;  %v4870_v17 = vpack.c.bf16 %v86_v14, %v82_v12  ;;  %v81_v19 = vld [vmem:[#allocation3 + $0x40] sm:$0xff]  ;;  %v83_v21 = vld [vmem:[#allocation3 + $0x50] sm:$0xff] }
  0x3b   :  { %4869 = vmatpush1.bf16.msra.mxu0 %v4868_v9  ;;  %v4902_v18 = vpack.c.bf16 %v88_v16, %v84_v15  ;;  %v85_v20 = vld [vmem:[#allocation3 + $0x60] sm:$0xff]  ;;  %v87_v23 = vld [vmem:[#allocation3 + $0x70] sm:$0xff]  ;;  %v90_v24 = vld [vmem:[#allocation3 + $0x88] sm:$0xff] }
  0x3c   :  { %4901 = vmatpush1.bf16.msra.mxu1 %v4900_v13  ;;  %v4872_v22 = vpack.c.bf16 %v85_v20, %v81_v19  ;;  %v94_v25 = vld [vmem:[#allocation3 + $0xa8] sm:$0xff]  ;;  %4871 = vmatprep.subr.bf16.mxu0 %v4870_v17  ;;  %v4904_v26 = vpack.c.bf16 %v87_v23, %v83_v21  ;;  %v92_v28 = vld [vmem:[#allocation3 + $0x98] sm:$0xff]  ;;  %v89_v30 = vld [vmem:[#allocation3 + $0x80] sm:$0xff] }
  0x3d   :  { %4903 = vmatprep.subr.bf16.mxu1 %v4902_v18  ;;  %v4874_v27 = vpack.c.bf16 %v94_v25, %v90_v24  ;;  %v96_v29 = vld [vmem:[#allocation3 + $0xb8] sm:$0xff]  ;;  %v93_v32 = vld [vmem:[#allocation3 + $0xa0] sm:$0xff]  ;;  %v91_v33 = vld [vmem:[#allocation3 + $0x90] sm:$0xff] }
  0x3e   :  { %v4906_v31 = vpack.c.bf16 %v96_v29, %v92_v28  ;;  %v95_v34 = vld [vmem:[#allocation3 + $0xb0] sm:$0xff]  ;;  %v4876_v35 = vpack.c.bf16 %v93_v32, %v89_v30  ;;  %v98_v36 = vld [vmem:[#allocation3 + $0xc8] sm:$0xff]  ;;  %v100_v38 = vld [vmem:[#allocation3 + $0xd8] sm:$0xff] }
  0x3f   :  { %4873 = vmatpush1.bf16.msra.mxu0 %v4872_v22  ;;  %v102_v37 = vld [vmem:[#allocation3 + $0xe8] sm:$0xff]  ;;  %v4908_v39 = vpack.c.bf16 %v95_v34, %v91_v33  ;;  %v104_v41 = vld [vmem:[#allocation3 + $0xf8] sm:$0xff]  ;;  %v97_v42 = vld [vmem:[#allocation3 + $0xc0] sm:$0xff] }
  0x40   :  { %4905 = vmatpush1.bf16.msra.mxu1 %v4904_v26  ;;  %4875 = vmatprep.subr.bf16.mxu0 %v4874_v27  ;;  %v4878_v40 = vpack.c.bf16 %v102_v37, %v98_v36  ;;  %v101_v43 = vld [vmem:[#allocation3 + $0xe0] sm:$0xff]  ;;  %v4910_v44 = vpack.c.bf16 %v104_v41, %v100_v38  ;;  %v99_v45 = vld [vmem:[#allocation3 + $0xd0] sm:$0xff]  ;;  %v106_v47 = vld [vmem:[#allocation3 + $0x108] sm:$0xff] }
  0x41   :  { %4907 = vmatprep.subr.bf16.mxu1 %v4906_v31  ;;  %v103_v46 = vld [vmem:[#allocation3 + $0xf0] sm:$0xff]  ;;  %v110_v48 = vld [vmem:[#allocation3 + $0x128] sm:$0xff]  ;;  %v108_v49 = vld [vmem:[#allocation3 + $0x118] sm:$0xff]  ;;  %v4880_v51 = vpack.c.bf16 %v101_v43, %v97_v42 }
  0x42   :  { %v112_v50 = vld [vmem:[#allocation3 + $0x138] sm:$0xff]  ;;  %v4912_v52 = vpack.c.bf16 %v103_v46, %v99_v45  ;;  %v4882_v53 = vpack.c.bf16 %v110_v48, %v106_v47  ;;  %v105_v54 = vld [vmem:[#allocation3 + $0x100] sm:$0xff]  ;;  %v107_v56 = vld [vmem:[#allocation3 + $0x110] sm:$0xff] }
  0x43   :  { %4877 = vmatpush1.bf16.msra.mxu0 %v4876_v35  ;;  %v109_v55 = vld [vmem:[#allocation3 + $0x120] sm:$0xff]  ;;  %v4914_v57 = vpack.c.bf16 %v112_v50, %v108_v49  ;;  %v111_v58 = vld [vmem:[#allocation3 + $0x130] sm:$0xff]  ;;  %v114_v59 = vld [vmem:[#allocation3 + $0x148] sm:$0xff] }
  0x44   :  { %4909 = vmatpush1.bf16.msra.mxu1 %v4908_v39  ;;  %4879 = vmatprep.subr.bf16.mxu0 %v4878_v40  ;;  %v118_v60 = vld [vmem:[#allocation3 + $0x168] sm:$0xff]  ;;  %v116_v61 = vld [vmem:[#allocation3 + $0x158] sm:$0xff]  ;;  %v4884_v63 = vpack.c.bf16 %v109_v55, %v105_v54  ;;  %v4916_v1 = vpack.c.bf16 %v111_v58, %v107_v56  ;;  %v113_v3 = vld [vmem:[#allocation3 + $0x140] sm:$0xff]  ;;  %v6874_v40 = vmov 0.0|0.0  }
  0x45   :  { %4911 = vmatprep.subr.bf16.mxu1 %v4910_v44  ;;  %v120_v62 = vld [vmem:[#allocation3 + $0x178] sm:$0xff]  ;;  %v4886_v2 = vpack.c.bf16 %v118_v60, %v114_v59  ;;  %v117_v4 = vld [vmem:[#allocation3 + $0x160] sm:$0xff]  ;;  %v115_v5 = vld [vmem:[#allocation3 + $0x150] sm:$0xff] }
  0x46   :  { %v4918_v6 = vpack.c.bf16 %v120_v62, %v116_v61  ;;  %v119_v7 = vld [vmem:[#allocation3 + $0x170] sm:$0xff]  ;;  %v122_v8 = vld [vmem:[#allocation3 + $0x188] sm:$0xff]  ;;  %v124_v10 = vld [vmem:[#allocation3 + $0x198] sm:$0xff]  ;;  %v4888_v12 = vpack.c.bf16 %v117_v4, %v113_v3 }
  0x47   :  { %4881 = vmatpush1.bf16.msra.mxu0 %v4880_v51  ;;  %v126_v9 = vld [vmem:[#allocation3 + $0x1a8] sm:$0xff]  ;;  %v128_v11 = vld [vmem:[#allocation3 + $0x1b8] sm:$0xff]  ;;  %v4920_v13 = vpack.c.bf16 %v119_v7, %v115_v5  ;;  %v121_v15 = vld [vmem:[#allocation3 + $0x180] sm:$0xff] }
  0x48   :  { %4913 = vmatpush1.bf16.msra.mxu1 %v4912_v52  ;;  %4883 = vmatprep.subr.bf16.mxu0 %v4882_v53  ;;  %v4890_v14 = vpack.c.bf16 %v126_v9, %v122_v8  ;;  %v125_v16 = vld [vmem:[#allocation3 + $0x1a0] sm:$0xff]  ;;  %v123_v17 = vld [vmem:[#allocation3 + $0x190] sm:$0xff]  ;;  %v4922_v18 = vpack.c.bf16 %v128_v11, %v124_v10  ;;  %v130_v20 = vld [vmem:[#allocation3 + $0x1c8] sm:$0xff] }
  0x49   :  { %4915 = vmatprep.subr.bf16.mxu1 %v4914_v57  ;;  %v127_v19 = vld [vmem:[#allocation3 + $0x1b0] sm:$0xff]  ;;  %v134_v21 = vld [vmem:[#allocation3 + $0x1e8] sm:$0xff]  ;;  %v132_v22 = vld [vmem:[#allocation3 + $0x1d8] sm:$0xff]  ;;  %v4892_v24 = vpack.c.bf16 %v125_v16, %v121_v15 }
  0x4a   :  { %v136_v23 = vld [vmem:[#allocation3 + $0x1f8] sm:$0xff]  ;;  %v4924_v25 = vpack.c.bf16 %v127_v19, %v123_v17  ;;  %v4894_v26 = vpack.c.bf16 %v134_v21, %v130_v20  ;;  %v129_v27 = vld [vmem:[#allocation3 + $0x1c0] sm:$0xff]  ;;  %v131_v30 = vld [vmem:[#allocation3 + $0x1d0] sm:$0xff] }
  0x4b   :  { %4885 = vmatpush1.bf16.msra.mxu0 %v4884_v63  ;;  %v133_v28 = vld [vmem:[#allocation3 + $0x1e0] sm:$0xff]  ;;  %v4926_v29 = vpack.c.bf16 %v136_v23, %v132_v22  ;;  %v135_v31 = vld [vmem:[#allocation3 + $0x1f0] sm:$0xff]  ;;  %v516_v36 = vld [vmem:[#allocation5 + $0x8] sm:$0xff] }
  0x4c   :  { %4917 = vmatpush1.bf16.msra.mxu1 %v4916_v1  ;;  %4887 = vmatprep.subr.bf16.mxu0 %v4886_v2  ;;  %v4896_v32 = vpack.c.bf16 %v133_v28, %v129_v27  ;;  %v4928_v33 = vpack.c.bf16 %v135_v31, %v131_v30  ;;  %v423_v34 = vld [vmem:[#allocation5] sm:$0xff]  ;;  %v517_v37 = vld [vmem:[#allocation5 + $0x28] sm:$0xff]  ;;  %v67_v53 = vld [vmem:[%s6866_s0 + $0x10] sm:$0xff] }
  0x4d   :  { %4919 = vmatprep.subr.bf16.mxu1 %v4918_v6  ;;  %v424_v35 = vld [vmem:[#allocation5 + $0x20] sm:$0xff]  ;;  %v6021_v41 = vpack.c.bf16 %v517_v37, %v516_v36  ;;  %v518_v44 = vld [vmem:[#allocation5 + $0x48] sm:$0xff]  ;;  %v68_v60 = vld [vmem:[%s6866_s0 + $0x18] sm:$0xff] }
  0x4e   :  { %v65_v38 = vld [vmem:[%s6866_s0] sm:$0xff]  ;;  %v6018_v39 = vpack.c.bf16 %v424_v35, %v423_v34  ;;  %v519_v45 = vld [vmem:[#allocation5 + $0x68] sm:$0xff]  ;;  %v609_v28 = vld [vmem:[#allocation5 + $0x10] sm:$0xff] }
  0x4f   :  { %4889 = vmatpush1.bf16.msra.mxu0 %v4888_v12  ;;  %v425_v42 = vld [vmem:[#allocation5 + $0x40] sm:$0xff]  ;;  %v66_v46 = vld [vmem:[%s6866_s0 + $0x8] sm:$0xff]  ;;  %v6032_v48 = vpack.c.bf16 %v519_v45, %v518_v44  ;;  %v697_v30 = vld [vmem:[#allocation5 + $0x18] sm:$0xff] }
  0x50   :  { %4921 = vmatpush1.bf16.msra.mxu1 %v4920_v13  ;;  %4891 = vmatprep.subr.bf16.mxu0 %v4890_v14  ;;  %v426_v43 = vld [vmem:[#allocation5 + $0x60] sm:$0xff]  ;;  %v520_v51 = vld [vmem:[#allocation5 + $0x88] sm:$0xff]  ;;  %v698_v31 = vld [vmem:[#allocation5 + $0x38] sm:$0xff] }
  0x51   :  { %4923 = vmatprep.subr.bf16.mxu1 %v4922_v18  ;;  %v6028_v47 = vpack.c.bf16 %v426_v43, %v425_v42  ;;  %v427_v49 = vld [vmem:[#allocation5 + $0x80] sm:$0xff]  ;;  %v521_v52 = vld [vmem:[#allocation5 + $0xa8] sm:$0xff]  ;;  %v71_v18 = vld [vmem:[%s6866_s0 + $0x30] sm:$0xff] }
  0x52   :  { %v428_v50 = vld [vmem:[#allocation5 + $0xa0] sm:$0xff]  ;;  %v6045_v55 = vpack.c.bf16 %v521_v52, %v520_v51  ;;  %v522_v58 = vld [vmem:[#allocation5 + $0xc8] sm:$0xff]  ;;  %v611_v34 = vld [vmem:[#allocation5 + $0x50] sm:$0xff] }
  0x53   :  { %4893 = vmatpush1.bf16.msra.mxu0 %v4892_v24  ;;  %v6041_v54 = vpack.c.bf16 %v428_v50, %v427_v49  ;;  %v429_v56 = vld [vmem:[#allocation5 + $0xc0] sm:$0xff]  ;;  %v523_v59 = vld [vmem:[#allocation5 + $0xe8] sm:$0xff]  ;;  %v612_v35 = vld [vmem:[#allocation5 + $0x70] sm:$0xff] }
  0x54   :  { %4925 = vmatpush1.bf16.msra.mxu1 %v4924_v25  ;;  %4895 = vmatprep.subr.bf16.mxu0 %v4894_v26  ;;  %v430_v57 = vld [vmem:[#allocation5 + $0xe0] sm:$0xff]  ;;  %v6058_v62 = vpack.c.bf16 %v523_v59, %v522_v58  ;;  %v524_v2 = vld [vmem:[#allocation5 + $0x108] sm:$0xff]  ;;  %v72_v25 = vld [vmem:[%s6866_s0 + $0x38] sm:$0xff] }
  0x55   :  { %4927 = vmatprep.subr.bf16.mxu1 %v4926_v29  ;;  %v6054_v61 = vpack.c.bf16 %v430_v57, %v429_v56  ;;  %v431_v63 = vld [vmem:[#allocation5 + $0x100] sm:$0xff]  ;;  %v525_v3 = vld [vmem:[#allocation5 + $0x128] sm:$0xff]  ;;  %v610_v29 = vld [vmem:[#allocation5 + $0x30] sm:$0xff] }
  0x56   :  { %v432_v1 = vld [vmem:[#allocation5 + $0x120] sm:$0xff]  ;;  %v6071_v6 = vpack.c.bf16 %v525_v3, %v524_v2  ;;  %v526_v9 = vld [vmem:[#allocation5 + $0x148] sm:$0xff]  ;;  %v699_v36 = vld [vmem:[#allocation5 + $0x58] sm:$0xff] }
  0x57   :  { %4897 = vmatpush1.bf16.msra.mxu0 %v4896_v32  ;;  %v69_v4 = vld [vmem:[%s6866_s0 + $0x20] sm:$0xff]  ;;  %v6067_v5 = vpack.c.bf16 %v432_v1, %v431_v63  ;;  %v527_v10 = vld [vmem:[#allocation5 + $0x168] sm:$0xff]  ;;  %v6116_v32 = vpack.c.bf16 %v610_v29, %v609_v28  ;;  %v700_v37 = vld [vmem:[#allocation5 + $0x78] sm:$0xff] }
  0x58   :  { %4929 = vmatpush1.bf16.msra.mxu1 %v4928_v33  ;;  %4930 = vmatprep.subr.bf16.mxu0 %v6874_v40  ;;  %v433_v7 = vld [vmem:[#allocation5 + $0x140] sm:$0xff]  ;;  %v70_v11 = vld [vmem:[%s6866_s0 + $0x28] sm:$0xff]  ;;  %v6084_v13 = vpack.c.bf16 %v527_v10, %v526_v9  ;;  %v6121_v33 = vpack.c.bf16 %v698_v31, %v697_v30  ;;  %v6134_v42 = vpack.c.bf16 %v700_v37, %v699_v36  ;;  %v613_v43 = vld [vmem:[#allocation5 + $0x90] sm:$0xff]  ;;  %v138_v30 = vlaneseq }
  0x59   :  { %4954 = vmatprep.subr.bf16.mxu1 %v6874_v40  ;;  %v434_v8 = vld [vmem:[#allocation5 + $0x160] sm:$0xff]  ;;  %v528_v16 = vld [vmem:[#allocation5 + $0x188] sm:$0xff]  ;;  %v614_v44 = vld [vmem:[#allocation5 + $0xb0] sm:$0xff] }
  0x5a   :  { %223 = vmatmul.mubr.f32.vlgmr.msra.gmra.mrb[0].mxu0 %v65_v38  ;;  %v6080_v12 = vpack.c.bf16 %v434_v8, %v433_v7  ;;  %v435_v14 = vld [vmem:[#allocation5 + $0x180] sm:$0xff]  ;;  %v529_v17 = vld [vmem:[#allocation5 + $0x1a8] sm:$0xff]  ;;  %v701_v45 = vld [vmem:[#allocation5 + $0x98] sm:$0xff]  ;;  %v6142_v49 = vpack.c.bf16 %v614_v44, %v613_v43  ;;  %v139_v31 = vshrl.u32 %v138_v30, 7 }
  0x5b   :  { %336 = vmatmul.mubr.f32.vlgmr.msra.gmra.mrb[0].mxu1 %v65_v38  ;;  %4932 = vmatpush3.bf16.msra.mxu0 %v6018_v39  ;;  %v436_v15 = vld [vmem:[#allocation5 + $0x1a0] sm:$0xff]  ;;  %v6097_v20 = vpack.c.bf16 %v529_v17, %v528_v16  ;;  %v530_v23 = vld [vmem:[#allocation5 + $0x1c8] sm:$0xff]  ;;  %v6130_v38 = vpack.c.bf16 %v612_v35, %v611_v34  ;;  %v615_v51 = vld [vmem:[#allocation5 + $0xd0] sm:$0xff] }
  0x5c   :  { %4956 = vmatpush3.bf16.msra.mxu1 %v6021_v41  ;;  %228 = vmatprep.mubr.f32.mxu0 %v6872_v0  ;;  %v6093_v19 = vpack.c.bf16 %v436_v15, %v435_v14  ;;  %v437_v21 = vld [vmem:[#allocation5 + $0x1c0] sm:$0xff]  ;;  %v531_v24 = vld [vmem:[#allocation5 + $0x1e8] sm:$0xff]  ;;  %v616_v52 = vld [vmem:[#allocation5 + $0xf0] sm:$0xff]  ;;  %v140_v34 = vsub.s32 0, %v139_v31  ;;  %v148_v37 = vsub.s32 2, %v139_v31  ;;  %v144_v43 = vsub.s32 1, %v139_v31 }
  0x5d   :  { %341 = vmatprep.mubr.f32.mxu1 %v6872_v0  ;;  %4933 = vmatprep.subr.bf16.mxu0 %v6874_v40  ;;  %v438_v22 = vld [vmem:[#allocation5 + $0x1e0] sm:$0xff]  ;;  %v6110_v27 = vpack.c.bf16 %v531_v24, %v530_v23  ;;  %v704_v56 = vld [vmem:[#allocation5 + $0xf8] sm:$0xff]  ;;  %v6150_v57 = vpack.c.bf16 %v616_v52, %v615_v51  ;;  %v617_v59 = vld [vmem:[#allocation5 + $0x110] sm:$0xff] }
  0x5e   :  { %229 = vmatmul.mubr.f32.gmra.mrb[2].mxu0 %v66_v46  ;;  %4957 = vmatprep.subr.bf16.mxu1 %v6874_v40  ;;  %v6106_v26 = vpack.c.bf16 %v438_v22, %v437_v21  ;;  %v705_v63 = vld [vmem:[#allocation5 + $0x118] sm:$0xff]  ;;  %v620_v7 = vld [vmem:[#allocation5 + $0x170] sm:$0xff]  ;;  %v61_v35 = vld [vmem:[%s6870_s4] sm:$0xf] }
  0x5f   :  { %342 = vmatmul.mubr.f32.gmra.mrb[2].mxu1 %v66_v46  ;;  %4935 = vmatpush3.bf16.msra.mxu0 %v6028_v47  ;;  %v702_v46 = vld [vmem:[#allocation5 + $0xb8] sm:$0xff]  ;;  %v621_v14 = vld [vmem:[#allocation5 + $0x190] sm:$0xff]  ;;  %v141_v52 = vrot.slane %v61_v35, %v140_v34 }
  0x60   :  { %4959 = vmatpush3.bf16.msra.mxu1 %v6032_v48  ;;  %234 = vmatprep.mubr.f32.mxu0 %v6872_v0  ;;  %v6146_v50 = vpack.c.bf16 %v702_v46, %v701_v45  ;;  %v706_v1 = vld [vmem:[#allocation5 + $0x138] sm:$0xff]  ;;  %v622_v15 = vld [vmem:[#allocation5 + $0x1b0] sm:$0xff]  ;;  %v152_v46 = vsub.s32 3, %v139_v31 }
  0x61   :  { %347 = vmatprep.mubr.f32.mxu1 %v6872_v0  ;;  %4936 = vmatprep.subr.bf16.mxu0 %v6874_v40  ;;  %v6162_v3 = vpack.c.bf16 %v706_v1, %v705_v63  ;;  %v707_v8 = vld [vmem:[#allocation5 + $0x158] sm:$0xff]  ;;  %v623_v22 = vld [vmem:[#allocation5 + $0x1d0] sm:$0xff] }
  0x62   :  { %235 = vmatmul.mubr.f32.gmra.mrb[4].mxu0 %v67_v53  ;;  %4960 = vmatprep.subr.bf16.mxu1 %v6874_v40  ;;  %v708_v9 = vld [vmem:[#allocation5 + $0x178] sm:$0xff]  ;;  %v624_v23 = vld [vmem:[#allocation5 + $0x1f0] sm:$0xff] }
  0x63   :  { %348 = vmatmul.mubr.f32.gmra.mrb[4].mxu1 %v67_v53  ;;  %4938 = vmatpush3.bf16.msra.mxu0 %v6041_v54  ;;  %v703_v53 = vld [vmem:[#allocation5 + $0xd8] sm:$0xff]  ;;  %v6182_v28 = vpack.c.bf16 %v624_v23, %v623_v22 }
  0x64   :  { %4962 = vmatpush3.bf16.msra.mxu1 %v6045_v55  ;;  %240 = vmatprep.mubr.f32.mxu0 %v6872_v0  ;;  %v6154_v58 = vpack.c.bf16 %v704_v56, %v703_v53  ;;  %v709_v16 = vld [vmem:[#allocation5 + $0x198] sm:$0xff]  ;;  %v6242_v53 = vrot.slane %v61_v35, %v148_v37  ;;  %v145_v56 = vrot.slane %v61_v35, %v144_v43 }
  0x65   :  { %353 = vmatprep.mubr.f32.mxu1 %v6872_v0  ;;  %4939 = vmatprep.subr.bf16.mxu0 %v6874_v40  ;;  %v710_v17 = vld [vmem:[#allocation5 + $0x1b8] sm:$0xff] }
  0x66   :  { %241 = vmatmul.mubr.f32.gmra.mrb[6].mxu0 %v68_v60  ;;  %4963 = vmatprep.subr.bf16.mxu1 %v6874_v40  ;;  %v6178_v21 = vpack.c.bf16 %v710_v17, %v709_v16  ;;  %v711_v24 = vld [vmem:[#allocation5 + $0x1d8] sm:$0xff] }
  0x67   :  { %354 = vmatmul.mubr.f32.gmra.mrb[6].mxu1 %v68_v60  ;;  %4941 = vmatpush3.bf16.msra.mxu0 %v6054_v61  ;;  %v618_v60 = vld [vmem:[#allocation5 + $0x130] sm:$0xff] }
  0x68   :  { %4965 = vmatpush3.bf16.msra.mxu1 %v6058_v62  ;;  %246 = vmatprep.mubr.f32.mxu0 %v6872_v0  ;;  %v6158_v2 = vpack.c.bf16 %v618_v60, %v617_v59  ;;  %v6244_v60 = vrot.slane %v61_v35, %v152_v46 }
  0x69   :  { %359 = vmatprep.mubr.f32.mxu1 %v6872_v0  ;;  %4942 = vmatprep.subr.bf16.mxu0 %v6874_v40 }
  0x6a   :  { %247 = vmatmul.mubr.f32.gmra.mrb[8].mxu0 %v69_v4  ;;  %4966 = vmatprep.subr.bf16.mxu1 %v6874_v40 }
  0x6b   :  { %360 = vmatmul.mubr.f32.gmra.mrb[8].mxu1 %v69_v4  ;;  %4944 = vmatpush3.bf16.msra.mxu0 %v6067_v5  ;;  %v619_v4 = vld [vmem:[#allocation5 + $0x150] sm:$0xff] }
  0x6c   :  { %4968 = vmatpush3.bf16.msra.mxu1 %v6071_v6  ;;  %252 = vmatprep.mubr.f32.mxu0 %v6872_v0  ;;  %v6166_v10 = vpack.c.bf16 %v620_v7, %v619_v4 }
  0x6d   :  { %365 = vmatprep.mubr.f32.mxu1 %v6872_v0  ;;  %4945 = vmatprep.subr.bf16.mxu0 %v6874_v40 }
  0x6e   :  { %253 = vmatmul.mubr.f32.gmra.mrb[10].mxu0 %v70_v11  ;;  %4969 = vmatprep.subr.bf16.mxu1 %v6874_v40 }
  0x6f   :  { %366 = vmatmul.mubr.f32.gmra.mrb[10].mxu1 %v70_v11  ;;  %4947 = vmatpush3.bf16.msra.mxu0 %v6080_v12  ;;  %v6170_v11 = vpack.c.bf16 %v708_v9, %v707_v8 }
  0x70   :  { %4971 = vmatpush3.bf16.msra.mxu1 %v6084_v13  ;;  %258 = vmatprep.mubr.f32.mxu0 %v6872_v0 }
  0x71   :  { %371 = vmatprep.mubr.f32.mxu1 %v6872_v0  ;;  %4948 = vmatprep.subr.bf16.mxu0 %v6874_v40 }
  0x72   :  { %259 = vmatmul.mubr.f32.gmra.mrb[12].mxu0 %v71_v18  ;;  %4972 = vmatprep.subr.bf16.mxu1 %v6874_v40 }
  0x73   :  { %372 = vmatmul.mubr.f32.gmra.mrb[12].mxu1 %v71_v18  ;;  %4950 = vmatpush3.bf16.msra.mxu0 %v6093_v19  ;;  %v6174_v18 = vpack.c.bf16 %v622_v15, %v621_v14 }
  0x74   :  { %4974 = vmatpush3.bf16.msra.mxu1 %v6097_v20  ;;  %264 = vmatprep.mubr.f32.mxu0 %v6872_v0 }
  0x75   :  { %377 = vmatprep.mubr.f32.mxu1 %v6872_v0  ;;  %4951 = vmatprep.subr.bf16.mxu0 %v6874_v40 }
  0x76   :  { %265 = vmatmul.mubr.f32.gmra.mrb[14].mxu0 %v72_v25  ;;  %4975 = vmatprep.subr.bf16.mxu1 %v6874_v40 }
  0x77   :  { %378 = vmatmul.mubr.f32.gmra.mrb[14].mxu1 %v72_v25  ;;  %4953 = vmatpush3.bf16.msra.mxu0 %v6106_v26  ;;  %v712_v25 = vld [vmem:[#allocation5 + $0x1f8] sm:$0xff] }
  0x78   :  { %4977 = vmatpush3.bf16.msra.mxu1 %v6110_v27  ;;  %3743 = vmatprep.mubr.msk.f32.mxu0 %vm5939_vm0, %v6872_v0  ;;  %v6186_v29 = vpack.c.bf16 %v712_v25, %v711_v24 }
  0x79   :  { %3778 = vmatprep.mubr.msk.f32.mxu1 %vm5939_vm0, %v6872_v0  ;;  %4978 = vmatprep.subr.bf16.mxu0 %v6874_v40 }
  0x7a   :  { %3744 = vmatmul.mubr.f32.vlgmr.msra.gmra.mrb[16].mxu0 %v6872_v0  ;;  %5002 = vmatprep.subr.bf16.mxu1 %v6874_v40 }
  0x7b   :  { %3779 = vmatmul.mubr.f32.vlgmr.msra.gmra.mrb[16].mxu1 %v6872_v0  ;;  %4980 = vmatpush3.bf16.msra.mxu0 %v6116_v32 }
  0x7c   :  { %5004 = vmatpush3.bf16.msra.mxu1 %v6121_v33  ;;  %4981 = vmatprep.subr.bf16.mxu0 %v6874_v40 }
  0x7d   :  { %5005 = vmatprep.subr.bf16.mxu1 %v6874_v40  ;;  %3813 = vmatprep.mubr.msk.f32.mxu0 %vm5939_vm0, %v6872_v0 }
  0x7e   :  { %3848 = vmatprep.mubr.msk.f32.mxu1 %vm5939_vm0, %v6872_v0 }
  0x7f   :  { %4983 = vmatpush3.bf16.msra.mxu0 %v6130_v38 }
  0x80   :  { %5007 = vmatpush3.bf16.msra.mxu1 %v6134_v42  ;;  %4984 = vmatprep.subr.bf16.mxu0 %v6874_v40 }
  0x81   :  { %5008 = vmatprep.subr.bf16.mxu1 %v6874_v40 }
  0x83   :  { %4986 = vmatpush3.bf16.msra.mxu0 %v6142_v49 }
  0x84   :  { %5010 = vmatpush3.bf16.msra.mxu1 %v6146_v50  ;;  %4987 = vmatprep.subr.bf16.mxu0 %v6874_v40 }
  0x85   :  { %5011 = vmatprep.subr.bf16.mxu1 %v6874_v40 }
  0x87   :  { %4989 = vmatpush3.bf16.msra.mxu0 %v6150_v57 }
  0x88   :  { %5013 = vmatpush3.bf16.msra.mxu1 %v6154_v58  ;;  %4990 = vmatprep.subr.bf16.mxu0 %v6874_v40 }
  0x89   :  { %5014 = vmatprep.subr.bf16.mxu1 %v6874_v40 }
  0x8b   :  { %4992 = vmatpush3.bf16.msra.mxu0 %v6158_v2 }
  0x8c   :  { %5016 = vmatpush3.bf16.msra.mxu1 %v6162_v3  ;;  %4993 = vmatprep.subr.bf16.mxu0 %v6874_v40 }
  0x8d   :  { %5017 = vmatprep.subr.bf16.mxu1 %v6874_v40 }
  0x8f   :  { %4995 = vmatpush3.bf16.msra.mxu0 %v6166_v10 }
  0x90   :  { %5019 = vmatpush3.bf16.msra.mxu1 %v6170_v11  ;;  %4996 = vmatprep.subr.bf16.mxu0 %v6874_v40 }
  0x91   :  { %5020 = vmatprep.subr.bf16.mxu1 %v6874_v40 }
  0x93   :  { %4998 = vmatpush3.bf16.msra.mxu0 %v6174_v18 }
  0x94   :  { %5022 = vmatpush3.bf16.msra.mxu1 %v6178_v21  ;;  %4999 = vmatprep.subr.bf16.mxu0 %v6874_v40 }
  0x95   :  { %5023 = vmatprep.subr.bf16.mxu1 %v6874_v40 }
  0x97   :  { %5001 = vmatpush3.bf16.msra.mxu0 %v6182_v28 }
  0x98   :  { %5025 = vmatpush3.bf16.msra.mxu1 %v6186_v29  ;;  %5026 = vmatprep.subr.bf16.mxu0 %v6874_v40 }
  0x99   :  { %5050 = vmatprep.subr.bf16.mxu1 %v6874_v40 }
  0x9a   :  { %3814 = vmatmul.mubr.f32.vlgmr.msra.gmra.mrb[18].mxu0 %v6872_v0 }
  0x9b   :  { %3849 = vmatmul.mubr.f32.vlgmr.msra.gmra.mrb[18].mxu1 %v6872_v0  ;;  %5028 = vmatpush3.bf16.msra.mxu0 %v6018_v39 }
  0x9c   :  { %5052 = vmatpush3.bf16.msra.mxu1 %v6021_v41  ;;  %5029 = vmatprep.subr.bf16.mxu0 %v6874_v40 }
  0x9d   :  { %5053 = vmatprep.subr.bf16.mxu1 %v6874_v40  ;;  %3883 = vmatprep.mubr.msk.f32.mxu0 %vm5939_vm0, %v6872_v0 }
  0x9e   :  { %3918 = vmatprep.mubr.msk.f32.mxu1 %vm5939_vm0, %v6872_v0 }
  0x9f   :  { %5031 = vmatpush3.bf16.msra.mxu0 %v6028_v47 }
  0xa0   :  { %5055 = vmatpush3.bf16.msra.mxu1 %v6032_v48  ;;  %5032 = vmatprep.subr.bf16.mxu0 %v6874_v40 }
  0xa1   :  { %5056 = vmatprep.subr.bf16.mxu1 %v6874_v40 }
  0xa3   :  { %5034 = vmatpush3.bf16.msra.mxu0 %v6041_v54 }
  0xa4   :  { %5058 = vmatpush3.bf16.msra.mxu1 %v6045_v55  ;;  %5035 = vmatprep.subr.bf16.mxu0 %v6874_v40 }
  0xa5   :  { %5059 = vmatprep.subr.bf16.mxu1 %v6874_v40 }
  0xa7   :  { %5037 = vmatpush3.bf16.msra.mxu0 %v6054_v61 }
  0xa8   :  { %5061 = vmatpush3.bf16.msra.mxu1 %v6058_v62  ;;  %5038 = vmatprep.subr.bf16.mxu0 %v6874_v40 }
  0xa9   :  { %5062 = vmatprep.subr.bf16.mxu1 %v6874_v40 }
  0xab   :  { %5040 = vmatpush3.bf16.msra.mxu0 %v6067_v5 }
  0xac   :  { %5064 = vmatpush3.bf16.msra.mxu1 %v6071_v6  ;;  %5041 = vmatprep.subr.bf16.mxu0 %v6874_v40 }
  0xad   :  { %5065 = vmatprep.subr.bf16.mxu1 %v6874_v40 }
  0xaf   :  { %5043 = vmatpush3.bf16.msra.mxu0 %v6080_v12 }
  0xb0   :  { %5067 = vmatpush3.bf16.msra.mxu1 %v6084_v13  ;;  %5044 = vmatprep.subr.bf16.mxu0 %v6874_v40 }
  0xb1   :  { %5068 = vmatprep.subr.bf16.mxu1 %v6874_v40 }
  0xb3   :  { %5046 = vmatpush3.bf16.msra.mxu0 %v6093_v19 }
  0xb4   :  { %5070 = vmatpush3.bf16.msra.mxu1 %v6097_v20  ;;  %5047 = vmatprep.subr.bf16.mxu0 %v6874_v40 }
  0xb5   :  { %5071 = vmatprep.subr.bf16.mxu1 %v6874_v40 }
  0xb7   :  { %5049 = vmatpush3.bf16.msra.mxu0 %v6106_v26 }
  0xb8   :  { %5073 = vmatpush3.bf16.msra.mxu1 %v6110_v27  ;;  %5074 = vmatprep.subr.bf16.mxu0 %v6874_v40 }
  0xb9   :  { %5098 = vmatprep.subr.bf16.mxu1 %v6874_v40 }
 0x12d   :  { %v6234_v36 = vpop.f32.mrb[0].mxu0 }
 0x12e   :  { %v6236_v44 = vpop.f32.mrb[0].mxu1  ;;  %v6238_v45 = vpop.f32.mrb[1].mxu0 }
 0x12f   :  { %v6240_v51 = vpop.f32.mrb[1].mxu1 }
 0x131   :  { %v230_v59 = vpop.f32.mrb[2].mxu0 }
 0x132   :  { %v6246_v63 = vadd.f32 %v230_v59, %v141_v52  ;;  %v343_v1 = vpop.f32.mrb[2].mxu1  ;;  %v232_v4 = vpop.f32.mrb[3].mxu0 }
 0x133   :  { %v6249_v7 = vadd.f32 %v343_v1, %v6242_v53  ;;  %v6251_v8 = vadd.f32 %v232_v4, %v145_v56  ;;  %v345_v9 = vpop.f32.mrb[3].mxu1 }
 0x134   :  { %v6254_v14 = vadd.f32 %v345_v9, %v6244_v60 }
 0x135   :  { %v236_v15 = vpop.f32.mrb[4].mxu0 }
 0x136   :  { %v6256_v16 = vadd.f32 %v236_v15, %v141_v52  ;;  %v349_v17 = vpop.f32.mrb[4].mxu1  ;;  %v238_v22 = vpop.f32.mrb[5].mxu0 }
 0x137   :  { %v6259_v23 = vadd.f32 %v349_v17, %v6242_v53  ;;  %v6261_v24 = vadd.f32 %v238_v22, %v145_v56  ;;  %v351_v25 = vpop.f32.mrb[5].mxu1 }
 0x138   :  { %v6264_v30 = vadd.f32 %v351_v25, %v6244_v60 }
 0x139   :  { %v242_v31 = vpop.f32.mrb[6].mxu0 }
 0x13a   :  { %v6266_v34 = vadd.f32 %v242_v31, %v141_v52  ;;  %v355_v35 = vpop.f32.mrb[6].mxu1  ;;  %v244_v37 = vpop.f32.mrb[7].mxu0 }
 0x13b   :  { %v6269_v43 = vadd.f32 %v355_v35, %v6242_v53  ;;  %v6271_v46 = vadd.f32 %v244_v37, %v145_v56  ;;  %v357_v59 = vpop.f32.mrb[7].mxu1 }
 0x13c   :  { %6876 = vst [vmem:[#allocation10_spill] sm:$0xff] %v6266_v34  ;;  %v6274_v1 = vadd.f32 %v357_v59, %v6244_v60 }
 0x13d   :  { %6877 = vst [vmem:[#allocation11_spill] sm:$0xff] %v6269_v43  ;;  %6878 = vst [vmem:[#allocation12_spill] sm:$0xff] %v6271_v46  ;;  %v248_v4 = vpop.f32.mrb[8].mxu0 }
 0x13e   :  { %6879 = vst [vmem:[#allocation13_spill] sm:$0xff] %v6274_v1  ;;  %v6276_v9 = vadd.f32 %v248_v4, %v141_v52  ;;  %v361_v15 = vpop.f32.mrb[8].mxu1  ;;  %v250_v17 = vpop.f32.mrb[9].mxu0 }
 0x13f   :  { %v6279_v22 = vadd.f32 %v361_v15, %v6242_v53  ;;  %v6281_v25 = vadd.f32 %v250_v17, %v145_v56  ;;  %v363_v31 = vpop.f32.mrb[9].mxu1 }
 0x140   :  { %6880 = vst [vmem:[#allocation14_spill] sm:$0xff] %v6276_v9  ;;  %v6284_v35 = vadd.f32 %v363_v31, %v6244_v60 }
 0x141   :  { %6881 = vst [vmem:[#allocation15_spill] sm:$0xff] %v6279_v22  ;;  %6882 = vst [vmem:[#allocation16_spill] sm:$0xff] %v6281_v25  ;;  %v254_v37 = vpop.f32.mrb[10].mxu0 }
 0x142   :  { %6883 = vst [vmem:[#allocation17_spill] sm:$0xff] %v6284_v35  ;;  %v6286_v0 = vadd.f32 %v254_v37, %v141_v52  ;;  %v367_v40 = vpop.f32.mrb[10].mxu1  ;;  %v256_v59 = vpop.f32.mrb[11].mxu0 }
 0x143   :  { %v6289_v1 = vadd.f32 %v367_v40, %v6242_v53  ;;  %v6291_v4 = vadd.f32 %v256_v59, %v145_v56  ;;  %v369_v9 = vpop.f32.mrb[11].mxu1 }
 0x144   :  { %6884 = vst [vmem:[#allocation18_spill] sm:$0xff] %v6286_v0  ;;  %v6294_v15 = vadd.f32 %v369_v9, %v6244_v60 }
 0x145   :  { %6885 = vst [vmem:[#allocation19_spill] sm:$0xff] %v6289_v1  ;;  %6886 = vst [vmem:[#allocation20_spill] sm:$0xff] %v6291_v4  ;;  %v260_v17 = vpop.f32.mrb[12].mxu0 }
 0x146   :  { %6887 = vst [vmem:[#allocation21_spill] sm:$0xff] %v6294_v15  ;;  %v6296_v22 = vadd.f32 %v260_v17, %v141_v52  ;;  %v373_v25 = vpop.f32.mrb[12].mxu1  ;;  %v262_v31 = vpop.f32.mrb[13].mxu0 }
 0x147   :  { %v6299_v35 = vadd.f32 %v373_v25, %v6242_v53  ;;  %v6301_v37 = vadd.f32 %v262_v31, %v145_v56  ;;  %v375_v0 = vpop.f32.mrb[13].mxu1  ;;  %v225_v25 = vadd.f32 %v6234_v36, %v141_v52  ;;  %v338_v36 = vadd.f32 %v6236_v44, %v6242_v53 }
 0x148   :  { %6888 = vst [vmem:[#allocation22_spill] sm:$0xff] %v6296_v22  ;;  %v6304_v40 = vadd.f32 %v375_v0, %v6244_v60 }
 0x149   :  { %6889 = vst [vmem:[#allocation23_spill] sm:$0xff] %v6299_v35  ;;  %6890 = vst [vmem:[#allocation24_spill] sm:$0xff] %v6301_v37  ;;  %v266_v59 = vpop.f32.mrb[14].mxu0  ;;  %v227_v35 = vadd.f32 %v6238_v45, %v145_v56  ;;  %v340_v45 = vadd.f32 %v6240_v51, %v6244_v60 }
 0x14a   :  { %6891 = vst [vmem:[#allocation25_spill] sm:$0xff] %v6304_v40  ;;  %v6306_v1 = vadd.f32 %v266_v59, %v141_v52  ;;  %v379_v4 = vpop.f32.mrb[14].mxu1  ;;  %v268_v9 = vpop.f32.mrb[15].mxu0 }
 0x14b   :  { %v6309_v15 = vadd.f32 %v379_v4, %v6242_v53  ;;  %v6311_v17 = vadd.f32 %v268_v9, %v145_v56  ;;  %v381_v22 = vpop.f32.mrb[15].mxu1 }
 0x14c   :  { %6892 = vst [vmem:[#allocation26_spill] sm:$0xff] %v6306_v1  ;;  %v6315_v31 = vadd.f32 %v381_v22, %v6244_v60 }
 0x14d   :  { %6893 = vst [vmem:[#allocation27_spill] sm:$0xff] %v6309_v15  ;;  %6894 = vst [vmem:[#allocation28_spill] sm:$0xff] %v6311_v17  ;;  %v505_v0 = vpop.f32.mrb[16].mxu0 }
 0x14e   :  { %v509_v40 = vadd.f32 %v505_v0, %v225_v25  ;;  %v598_v37 = vpop.f32.mrb[16].mxu1  ;;  %v3745_v59 = vpop.f32.mrb[17].mxu0 }
 0x14f   :  { %v602_v1 = vadd.f32 %v598_v37, %v227_v35  ;;  %v3780_v43 = vpop.f32.mrb[17].mxu1  ;;  %v6895_v59 = vmov 0.0|0.0  }
 0x150   :  { %v3123_v34 = vmul.f32 -1.442695, %v509_v40 }
 0x151   :  { %v3124_v46 = vmul.f32 -1.442695, %v602_v1 }
 0x153   :  { %5732 = vpow2.f32 %v3124_v46 }
 0x154   :  { %5734 = vpow2.f32 %v3123_v34 }
 0x15d   :  { %v5733_v4 = vpop.eup %5732 }
 0x15e   :  { %v5735_v9 = vpop.eup %5734  ;;  %v606_v15 = vadd.f32 1.0, %v5733_v4  ;;  %v6896_v4 = vmov 0.0  }
 0x15f   :  { %v513_v17 = vadd.f32 1.0, %v5735_v9 }
 0x160   :  { %5736 = vrcp.f32 %v606_v15 }
 0x161   :  { %5738 = vrcp.f32 %v513_v17 }
 0x16a   :  { %v5737_v46 = vpop.eup %5736 }
 0x16b   :  { %v5739_v37 = vpop.eup %5738  ;;  %v790_v25 = vmul.f32 0.0, %v5737_v46 }
 0x16d   :  { %v691_v52 = vpop.f32.mrb[18].mxu0 }
 0x16e   :  { %v695_v56 = vadd.f32 %v691_v52, %v338_v36  ;;  %v779_v22 = vpop.f32.mrb[18].mxu1  ;;  %v3815_v35 = vpop.f32.mrb[19].mxu0 }
 0x16f   :  { %v783_v43 = vadd.f32 %v779_v22, %v340_v45  ;;  %v3850_v1 = vpop.f32.mrb[19].mxu1 }
 0x170   :  { %5740 = vtanh.f32 %v695_v56 }
 0x171   :  { %v3125_v34 = vmul.f32 -1.442695, %v783_v43 }
 0x173   :  { %5742 = vpow2.f32 %v3125_v34 }
 0x17a   :  { %v5741_v40 = vpop.eup %5740 }
 0x17b   :  { %v791_v0 = vmul.f32 %v5741_v40, %v5739_v37 }
 0x17d   :  { %v5743_v44 = vpop.eup %5742  ;;  %v6322_v53 = vadd.f32 %v791_v0, %v790_v25 }
 0x17e   :  { %v787_v51 = vadd.f32 1.0, %v5743_v44 }
 0x17f   :  { %5744 = vtanh.f32 %v6322_v53 }
 0x180   :  { %5746 = vrcp.f32 %v787_v51 }
 0x189   :  { %v5745_v60 = vpop.eup %5744 }
 0x18a   :  { %v5747_v15 = vpop.eup %5746 }
 0x18b   :  { %v794_v17 = vmul.f32 %v5747_v15, %v5745_v60 }
 0x18d   :  { %3884 = vmatmul.mubr.f32.vlgmr.msra.gmra.mrb[20].mxu0 %v794_v17  ;;  %3919 = vmatmul.mubr.f32.vlgmr.msra.gmra.mrb[20].mxu1 %v794_v17 }
 0x18e   :  { %5076 = vmatpush3.bf16.msra.mxu0 %v6116_v32  ;;  %5100 = vmatpush3.bf16.msra.mxu1 %v6121_v33 }
 0x18f   :  { %5077 = vmatprep.subr.bf16.mxu0 %v6895_v59  ;;  %5101 = vmatprep.subr.bf16.mxu1 %v6895_v59 }
 0x190   :  { %3953 = vmatprep.mubr.msk.f32.mxu0 %vm5939_vm0, %v6896_v4  ;;  %3988 = vmatprep.mubr.msk.f32.mxu1 %vm5939_vm0, %v6896_v4 }
 0x192   :  { %5079 = vmatpush3.bf16.msra.mxu0 %v6130_v38  ;;  %5103 = vmatpush3.bf16.msra.mxu1 %v6134_v42 }
 0x193   :  { %5080 = vmatprep.subr.bf16.mxu0 %v6895_v59  ;;  %5104 = vmatprep.subr.bf16.mxu1 %v6895_v59 }
 0x196   :  { %5082 = vmatpush3.bf16.msra.mxu0 %v6142_v49  ;;  %5106 = vmatpush3.bf16.msra.mxu1 %v6146_v50 }
 0x197   :  { %5083 = vmatprep.subr.bf16.mxu0 %v6895_v59  ;;  %5107 = vmatprep.subr.bf16.mxu1 %v6895_v59 }
 0x19a   :  { %5085 = vmatpush3.bf16.msra.mxu0 %v6150_v57  ;;  %5109 = vmatpush3.bf16.msra.mxu1 %v6154_v58 }
 0x19b   :  { %5086 = vmatprep.subr.bf16.mxu0 %v6895_v59  ;;  %5110 = vmatprep.subr.bf16.mxu1 %v6895_v59 }
 0x19e   :  { %5088 = vmatpush3.bf16.msra.mxu0 %v6158_v2  ;;  %5112 = vmatpush3.bf16.msra.mxu1 %v6162_v3 }
 0x19f   :  { %5089 = vmatprep.subr.bf16.mxu0 %v6895_v59  ;;  %5113 = vmatprep.subr.bf16.mxu1 %v6895_v59 }
 0x1a2   :  { %5091 = vmatpush3.bf16.msra.mxu0 %v6166_v10  ;;  %5115 = vmatpush3.bf16.msra.mxu1 %v6170_v11 }
 0x1a3   :  { %5092 = vmatprep.subr.bf16.mxu0 %v6895_v59  ;;  %5116 = vmatprep.subr.bf16.mxu1 %v6895_v59 }
 0x1a6   :  { %5094 = vmatpush3.bf16.msra.mxu0 %v6174_v18  ;;  %5118 = vmatpush3.bf16.msra.mxu1 %v6178_v21 }
 0x1a7   :  { %5095 = vmatprep.subr.bf16.mxu0 %v6895_v59  ;;  %5119 = vmatprep.subr.bf16.mxu1 %v6895_v59 }
 0x1aa   :  { %5097 = vmatpush3.bf16.msra.mxu0 %v6182_v28  ;;  %5121 = vmatpush3.bf16.msra.mxu1 %v6186_v29 }
 0x1ab   :  { %5122 = vmatprep.subr.bf16.mxu0 %v6895_v59  ;;  %5146 = vmatprep.subr.bf16.mxu1 %v6895_v59 }
 0x1ad   :  { %3954 = vmatmul.mubr.f32.vlgmr.msra.gmra.mrb[22].mxu0 %v794_v17  ;;  %3989 = vmatmul.mubr.f32.vlgmr.msra.gmra.mrb[22].mxu1 %v794_v17 }
 0x1ae   :  { %5124 = vmatpush3.bf16.msra.mxu0 %v6018_v39  ;;  %5148 = vmatpush3.bf16.msra.mxu1 %v6021_v41 }
 0x1af   :  { %5125 = vmatprep.subr.bf16.mxu0 %v6895_v59  ;;  %5149 = vmatprep.subr.bf16.mxu1 %v6895_v59 }
 0x1b0   :  { %4023 = vmatprep.mubr.msk.f32.mxu0 %vm5939_vm0, %v6896_v4  ;;  %4058 = vmatprep.mubr.msk.f32.mxu1 %vm5939_vm0, %v6896_v4 }
 0x1b2   :  { %5127 = vmatpush3.bf16.msra.mxu0 %v6028_v47  ;;  %5151 = vmatpush3.bf16.msra.mxu1 %v6032_v48 }
 0x1b3   :  { %5128 = vmatprep.subr.bf16.mxu0 %v6895_v59  ;;  %5152 = vmatprep.subr.bf16.mxu1 %v6895_v59 }
 0x1b6   :  { %5130 = vmatpush3.bf16.msra.mxu0 %v6041_v54  ;;  %5154 = vmatpush3.bf16.msra.mxu1 %v6045_v55 }
 0x1b7   :  { %5131 = vmatprep.subr.bf16.mxu0 %v6895_v59  ;;  %5155 = vmatprep.subr.bf16.mxu1 %v6895_v59 }
 0x1ba   :  { %5133 = vmatpush3.bf16.msra.mxu0 %v6054_v61  ;;  %5157 = vmatpush3.bf16.msra.mxu1 %v6058_v62 }
 0x1bb   :  { %5134 = vmatprep.subr.bf16.mxu0 %v6895_v59  ;;  %5158 = vmatprep.subr.bf16.mxu1 %v6895_v59 }
 0x1be   :  { %5136 = vmatpush3.bf16.msra.mxu0 %v6067_v5  ;;  %5160 = vmatpush3.bf16.msra.mxu1 %v6071_v6 }
 0x1bf   :  { %5137 = vmatprep.subr.bf16.mxu0 %v6895_v59  ;;  %5161 = vmatprep.subr.bf16.mxu1 %v6895_v59 }
 0x1c2   :  { %5139 = vmatpush3.bf16.msra.mxu0 %v6080_v12  ;;  %5163 = vmatpush3.bf16.msra.mxu1 %v6084_v13 }
 0x1c3   :  { %5140 = vmatprep.subr.bf16.mxu0 %v6895_v59  ;;  %5164 = vmatprep.subr.bf16.mxu1 %v6895_v59 }
 0x1c6   :  { %5142 = vmatpush3.bf16.msra.mxu0 %v6093_v19  ;;  %5166 = vmatpush3.bf16.msra.mxu1 %v6097_v20 }
 0x1c7   :  { %5143 = vmatprep.subr.bf16.mxu0 %v6895_v59  ;;  %5167 = vmatprep.subr.bf16.mxu1 %v6895_v59 }
 0x1ca   :  { %5145 = vmatpush3.bf16.msra.mxu0 %v6106_v26  ;;  %5169 = vmatpush3.bf16.msra.mxu1 %v6110_v27 }
 0x1cb   :  { %5170 = vmatprep.subr.bf16.mxu0 %v6895_v59  ;;  %5194 = vmatprep.subr.bf16.mxu1 %v6895_v59 }
 0x260   :  { %v868_v9 = vpop.f32.mrb[20].mxu0  ;;  %v945_v36 = vpop.f32.mrb[20].mxu1 }
 0x261   :  { %v872_v45 = vadd.f32 %v868_v9, %v6246_v63  ;;  %v949_v52 = vadd.f32 %v945_v36, %v6251_v8  ;;  %v3885_v56 = vpop.f32.mrb[21].mxu0  ;;  %v3920_v22 = vpop.f32.mrb[21].mxu1 }
 0x263   :  { %v3127_v35 = vmul.f32 -1.442695, %v949_v52  ;;  %v3126_v43 = vmul.f32 -1.442695, %v872_v45 }
 0x265   :  { %5748 = vpow2.f32 %v3127_v35 }
 0x266   :  { %5750 = vpow2.f32 %v3126_v43 }
 0x26f   :  { %v5749_v1 = vpop.eup %5748 }
 0x270   :  { %v5751_v34 = vpop.eup %5750  ;;  %v953_v46 = vadd.f32 1.0, %v5749_v1 }
 0x271   :  { %v876_v37 = vadd.f32 1.0, %v5751_v34 }
 0x272   :  { %5752 = vrcp.f32 %v953_v46 }
 0x273   :  { %5754 = vrcp.f32 %v876_v37 }
 0x27c   :  { %v5753_v60 = vpop.eup %5752 }
 0x27d   :  { %v5755_v15 = vpop.eup %5754  ;;  %v1105_v9 = vmul.f32 %v5753_v60, %v6322_v53 }
 0x280   :  { %v1022_v40 = vpop.f32.mrb[22].mxu0  ;;  %v1094_v25 = vpop.f32.mrb[22].mxu1 }
 0x281   :  { %v1026_v0 = vadd.f32 %v1022_v40, %v6249_v7  ;;  %v1098_v44 = vadd.f32 %v1094_v25, %v6254_v14  ;;  %v3955_v63 = vpop.f32.mrb[23].mxu0  ;;  %v3990_v51 = vpop.f32.mrb[23].mxu1 }
 0x283   :  { %5756 = vtanh.f32 %v1026_v0  ;;  %v3128_v8 = vmul.f32 -1.442695, %v1098_v44 }
 0x285   :  { %5758 = vpow2.f32 %v3128_v8 }
 0x28d   :  { %v5757_v17 = vpop.eup %5756 }
 0x28e   :  { %v1106_v36 = vmul.f32 %v5757_v17, %v5755_v15 }
 0x28f   :  { %v5759_v45 = vpop.eup %5758 }
 0x290   :  { %v6402_v52 = vadd.f32 %v1106_v36, %v1105_v9  ;;  %v1102_v56 = vadd.f32 1.0, %v5759_v45 }
 0x292   :  { %5760 = vtanh.f32 %v6402_v52 }
 0x293   :  { %5762 = vrcp.f32 %v1102_v56 }
 0x29c   :  { %v5761_v7 = vpop.eup %5760 }
 0x29d   :  { %v5763_v14 = vpop.eup %5762 }
 0x29e   :  { %v1109_v22 = vmul.f32 %v5763_v14, %v5761_v7 }
 0x2a0   :  { %4024 = vmatmul.mubr.f32.vlgmr.msra.gmra.mrb[24].mxu0 %v1109_v22  ;;  %4059 = vmatmul.mubr.f32.vlgmr.msra.gmra.mrb[24].mxu1 %v1109_v22 }
 0x2a1   :  { %5172 = vmatpush3.bf16.msra.mxu0 %v6116_v32  ;;  %5196 = vmatpush3.bf16.msra.mxu1 %v6121_v33 }
 0x2a2   :  { %5173 = vmatprep.subr.bf16.mxu0 %v6895_v59  ;;  %5197 = vmatprep.subr.bf16.mxu1 %v6895_v59 }
 0x2a3   :  { %4093 = vmatprep.mubr.msk.f32.mxu0 %vm5939_vm0, %v6896_v4  ;;  %4128 = vmatprep.mubr.msk.f32.mxu1 %vm5939_vm0, %v6896_v4 }
 0x2a5   :  { %5175 = vmatpush3.bf16.msra.mxu0 %v6130_v38  ;;  %5199 = vmatpush3.bf16.msra.mxu1 %v6134_v42 }
 0x2a6   :  { %5176 = vmatprep.subr.bf16.mxu0 %v6895_v59  ;;  %5200 = vmatprep.subr.bf16.mxu1 %v6895_v59 }
 0x2a9   :  { %5178 = vmatpush3.bf16.msra.mxu0 %v6142_v49  ;;  %5202 = vmatpush3.bf16.msra.mxu1 %v6146_v50 }
 0x2aa   :  { %5179 = vmatprep.subr.bf16.mxu0 %v6895_v59  ;;  %5203 = vmatprep.subr.bf16.mxu1 %v6895_v59 }
 0x2ad   :  { %5181 = vmatpush3.bf16.msra.mxu0 %v6150_v57  ;;  %5205 = vmatpush3.bf16.msra.mxu1 %v6154_v58 }
 0x2ae   :  { %5182 = vmatprep.subr.bf16.mxu0 %v6895_v59  ;;  %5206 = vmatprep.subr.bf16.mxu1 %v6895_v59 }
 0x2b1   :  { %5184 = vmatpush3.bf16.msra.mxu0 %v6158_v2  ;;  %5208 = vmatpush3.bf16.msra.mxu1 %v6162_v3 }
 0x2b2   :  { %5185 = vmatprep.subr.bf16.mxu0 %v6895_v59  ;;  %5209 = vmatprep.subr.bf16.mxu1 %v6895_v59 }
 0x2b5   :  { %5187 = vmatpush3.bf16.msra.mxu0 %v6166_v10  ;;  %5211 = vmatpush3.bf16.msra.mxu1 %v6170_v11 }
 0x2b6   :  { %5188 = vmatprep.subr.bf16.mxu0 %v6895_v59  ;;  %5212 = vmatprep.subr.bf16.mxu1 %v6895_v59 }
 0x2b9   :  { %5190 = vmatpush3.bf16.msra.mxu0 %v6174_v18  ;;  %5214 = vmatpush3.bf16.msra.mxu1 %v6178_v21 }
 0x2ba   :  { %5191 = vmatprep.subr.bf16.mxu0 %v6895_v59  ;;  %5215 = vmatprep.subr.bf16.mxu1 %v6895_v59 }
 0x2bd   :  { %5193 = vmatpush3.bf16.msra.mxu0 %v6182_v28  ;;  %5217 = vmatpush3.bf16.msra.mxu1 %v6186_v29 }
 0x2be   :  { %5218 = vmatprep.subr.bf16.mxu0 %v6895_v59  ;;  %5242 = vmatprep.subr.bf16.mxu1 %v6895_v59 }
 0x2c0   :  { %4094 = vmatmul.mubr.f32.vlgmr.msra.gmra.mrb[26].mxu0 %v1109_v22  ;;  %4129 = vmatmul.mubr.f32.vlgmr.msra.gmra.mrb[26].mxu1 %v1109_v22 }
 0x2c1   :  { %5220 = vmatpush3.bf16.msra.mxu0 %v6018_v39  ;;  %5244 = vmatpush3.bf16.msra.mxu1 %v6021_v41 }
 0x2c2   :  { %5221 = vmatprep.subr.bf16.mxu0 %v6895_v59  ;;  %5245 = vmatprep.subr.bf16.mxu1 %v6895_v59 }
 0x2c3   :  { %4163 = vmatprep.mubr.msk.f32.mxu0 %vm5939_vm0, %v6896_v4  ;;  %4198 = vmatprep.mubr.msk.f32.mxu1 %vm5939_vm0, %v6896_v4 }
 0x2c5   :  { %5223 = vmatpush3.bf16.msra.mxu0 %v6028_v47  ;;  %5247 = vmatpush3.bf16.msra.mxu1 %v6032_v48 }
 0x2c6   :  { %5224 = vmatprep.subr.bf16.mxu0 %v6895_v59  ;;  %5248 = vmatprep.subr.bf16.mxu1 %v6895_v59 }
 0x2c9   :  { %5226 = vmatpush3.bf16.msra.mxu0 %v6041_v54  ;;  %5250 = vmatpush3.bf16.msra.mxu1 %v6045_v55 }
 0x2ca   :  { %5227 = vmatprep.subr.bf16.mxu0 %v6895_v59  ;;  %5251 = vmatprep.subr.bf16.mxu1 %v6895_v59 }
 0x2cd   :  { %5229 = vmatpush3.bf16.msra.mxu0 %v6054_v61  ;;  %5253 = vmatpush3.bf16.msra.mxu1 %v6058_v62 }
 0x2ce   :  { %5230 = vmatprep.subr.bf16.mxu0 %v6895_v59  ;;  %5254 = vmatprep.subr.bf16.mxu1 %v6895_v59 }
 0x2d1   :  { %5232 = vmatpush3.bf16.msra.mxu0 %v6067_v5  ;;  %5256 = vmatpush3.bf16.msra.mxu1 %v6071_v6 }
 0x2d2   :  { %5233 = vmatprep.subr.bf16.mxu0 %v6895_v59  ;;  %5257 = vmatprep.subr.bf16.mxu1 %v6895_v59 }
 0x2d5   :  { %5235 = vmatpush3.bf16.msra.mxu0 %v6080_v12  ;;  %5259 = vmatpush3.bf16.msra.mxu1 %v6084_v13 }
 0x2d6   :  { %5236 = vmatprep.subr.bf16.mxu0 %v6895_v59  ;;  %5260 = vmatprep.subr.bf16.mxu1 %v6895_v59 }
 0x2d9   :  { %5238 = vmatpush3.bf16.msra.mxu0 %v6093_v19  ;;  %5262 = vmatpush3.bf16.msra.mxu1 %v6097_v20 }
 0x2da   :  { %5239 = vmatprep.subr.bf16.mxu0 %v6895_v59  ;;  %5263 = vmatprep.subr.bf16.mxu1 %v6895_v59 }
 0x2dd   :  { %5241 = vmatpush3.bf16.msra.mxu0 %v6106_v26  ;;  %5265 = vmatpush3.bf16.msra.mxu1 %v6110_v27 }
 0x2de   :  { %5266 = vmatprep.subr.bf16.mxu0 %v6895_v59  ;;  %5290 = vmatprep.subr.bf16.mxu1 %v6895_v59 }
 0x373   :  { %v1183_v53 = vpop.f32.mrb[24].mxu0  ;;  %v1260_v35 = vpop.f32.mrb[24].mxu1 }
 0x374   :  { %v1187_v43 = vadd.f32 %v1183_v53, %v6256_v16  ;;  %v1264_v1 = vadd.f32 %v1260_v35, %v6261_v24  ;;  %v4025_v34 = vpop.f32.mrb[25].mxu0  ;;  %v4060_v46 = vpop.f32.mrb[25].mxu1 }
 0x375   :  { %v6898_v46 = vld [vmem:[#allocation12_spill] sm:$0xff] }
 0x376   :  { %v3130_v37 = vmul.f32 -1.442695, %v1264_v1  ;;  %v3129_v40 = vmul.f32 -1.442695, %v1187_v43  ;;  %v6897_v1 = vld [vmem:[#allocation10_spill] sm:$0xff] }
 0x378   :  { %5764 = vpow2.f32 %v3130_v37 }
 0x379   :  { %5766 = vpow2.f32 %v3129_v40 }
 0x382   :  { %v5765_v25 = vpop.eup %5764 }
 0x383   :  { %v5767_v0 = vpop.eup %5766  ;;  %v1268_v44 = vadd.f32 1.0, %v5765_v25 }
 0x384   :  { %v1191_v63 = vadd.f32 1.0, %v5767_v0 }
 0x385   :  { %5768 = vrcp.f32 %v1268_v44 }
 0x386   :  { %5770 = vrcp.f32 %v1191_v63 }
 0x38f   :  { %v5769_v9 = vpop.eup %5768 }
 0x390   :  { %v5771_v36 = vpop.eup %5770  ;;  %v1420_v56 = vmul.f32 %v5769_v9, %v6402_v52  ;;  %v6900_v9 = vld [vmem:[#allocation13_spill] sm:$0xff] }
 0x393   :  { %v1337_v51 = vpop.f32.mrb[26].mxu0  ;;  %v1409_v8 = vpop.f32.mrb[26].mxu1 }
 0x394   :  { %v1341_v60 = vadd.f32 %v1337_v51, %v6259_v23  ;;  %v1413_v15 = vadd.f32 %v1409_v8, %v6264_v30  ;;  %v4095_v16 = vpop.f32.mrb[27].mxu0  ;;  %v4130_v17 = vpop.f32.mrb[27].mxu1 }
 0x395   :  { %v6899_v17 = vld [vmem:[#allocation11_spill] sm:$0xff] }
 0x396   :  { %5772 = vtanh.f32 %v1341_v60  ;;  %v3131_v24 = vmul.f32 -1.442695, %v1413_v15 }
 0x398   :  { %5774 = vpow2.f32 %v3131_v24 }
 0x3a0   :  { %v5773_v45 = vpop.eup %5772 }
 0x3a1   :  { %v1421_v7 = vmul.f32 %v5773_v45, %v5771_v36 }
 0x3a2   :  { %v5775_v14 = vpop.eup %5774 }
 0x3a3   :  { %v6482_v22 = vadd.f32 %v1421_v7, %v1420_v56  ;;  %v1417_v53 = vadd.f32 1.0, %v5775_v14 }
 0x3a5   :  { %5776 = vtanh.f32 %v6482_v22 }
 0x3a6   :  { %5778 = vrcp.f32 %v1417_v53 }
 0x3af   :  { %v5777_v23 = vpop.eup %5776 }
 0x3b0   :  { %v5779_v30 = vpop.eup %5778 }
 0x3b1   :  { %v1424_v35 = vmul.f32 %v5779_v30, %v5777_v23 }
 0x3b3   :  { %4164 = vmatmul.mubr.f32.vlgmr.msra.gmra.mrb[28].mxu0 %v1424_v35  ;;  %4199 = vmatmul.mubr.f32.vlgmr.msra.gmra.mrb[28].mxu1 %v1424_v35 }
 0x3b4   :  { %5268 = vmatpush3.bf16.msra.mxu0 %v6116_v32  ;;  %5292 = vmatpush3.bf16.msra.mxu1 %v6121_v33 }
 0x3b5   :  { %5269 = vmatprep.subr.bf16.mxu0 %v6895_v59  ;;  %5293 = vmatprep.subr.bf16.mxu1 %v6895_v59 }
 0x3b6   :  { %4233 = vmatprep.mubr.msk.f32.mxu0 %vm5939_vm0, %v6896_v4  ;;  %4268 = vmatprep.mubr.msk.f32.mxu1 %vm5939_vm0, %v6896_v4 }
 0x3b8   :  { %5271 = vmatpush3.bf16.msra.mxu0 %v6130_v38  ;;  %5295 = vmatpush3.bf16.msra.mxu1 %v6134_v42 }
 0x3b9   :  { %5272 = vmatprep.subr.bf16.mxu0 %v6895_v59  ;;  %5296 = vmatprep.subr.bf16.mxu1 %v6895_v59 }
 0x3bc   :  { %5274 = vmatpush3.bf16.msra.mxu0 %v6142_v49  ;;  %5298 = vmatpush3.bf16.msra.mxu1 %v6146_v50 }
 0x3bd   :  { %5275 = vmatprep.subr.bf16.mxu0 %v6895_v59  ;;  %5299 = vmatprep.subr.bf16.mxu1 %v6895_v59 }
 0x3c0   :  { %5277 = vmatpush3.bf16.msra.mxu0 %v6150_v57  ;;  %5301 = vmatpush3.bf16.msra.mxu1 %v6154_v58 }
 0x3c1   :  { %5278 = vmatprep.subr.bf16.mxu0 %v6895_v59  ;;  %5302 = vmatprep.subr.bf16.mxu1 %v6895_v59 }
 0x3c4   :  { %5280 = vmatpush3.bf16.msra.mxu0 %v6158_v2  ;;  %5304 = vmatpush3.bf16.msra.mxu1 %v6162_v3 }
 0x3c5   :  { %5281 = vmatprep.subr.bf16.mxu0 %v6895_v59  ;;  %5305 = vmatprep.subr.bf16.mxu1 %v6895_v59 }
 0x3c8   :  { %5283 = vmatpush3.bf16.msra.mxu0 %v6166_v10  ;;  %5307 = vmatpush3.bf16.msra.mxu1 %v6170_v11 }
 0x3c9   :  { %5284 = vmatprep.subr.bf16.mxu0 %v6895_v59  ;;  %5308 = vmatprep.subr.bf16.mxu1 %v6895_v59 }
 0x3cc   :  { %5286 = vmatpush3.bf16.msra.mxu0 %v6174_v18  ;;  %5310 = vmatpush3.bf16.msra.mxu1 %v6178_v21 }
 0x3cd   :  { %5287 = vmatprep.subr.bf16.mxu0 %v6895_v59  ;;  %5311 = vmatprep.subr.bf16.mxu1 %v6895_v59 }
 0x3d0   :  { %5289 = vmatpush3.bf16.msra.mxu0 %v6182_v28  ;;  %5313 = vmatpush3.bf16.msra.mxu1 %v6186_v29 }
 0x3d1   :  { %5314 = vmatprep.subr.bf16.mxu0 %v6895_v59  ;;  %5338 = vmatprep.subr.bf16.mxu1 %v6895_v59 }
 0x3d3   :  { %4234 = vmatmul.mubr.f32.vlgmr.msra.gmra.mrb[30].mxu0 %v1424_v35  ;;  %4269 = vmatmul.mubr.f32.vlgmr.msra.gmra.mrb[30].mxu1 %v1424_v35 }
 0x3d4   :  { %5316 = vmatpush3.bf16.msra.mxu0 %v6018_v39  ;;  %5340 = vmatpush3.bf16.msra.mxu1 %v6021_v41 }
 0x3d5   :  { %5317 = vmatprep.subr.bf16.mxu0 %v6895_v59  ;;  %5341 = vmatprep.subr.bf16.mxu1 %v6895_v59 }
 0x3d6   :  { %4303 = vmatprep.mubr.msk.f32.mxu0 %vm5939_vm0, %v6896_v4  ;;  %4338 = vmatprep.mubr.msk.f32.mxu1 %vm5939_vm0, %v6896_v4 }
 0x3d8   :  { %5319 = vmatpush3.bf16.msra.mxu0 %v6028_v47  ;;  %5343 = vmatpush3.bf16.msra.mxu1 %v6032_v48 }
 0x3d9   :  { %5320 = vmatprep.subr.bf16.mxu0 %v6895_v59  ;;  %5344 = vmatprep.subr.bf16.mxu1 %v6895_v59 }
 0x3dc   :  { %5322 = vmatpush3.bf16.msra.mxu0 %v6041_v54  ;;  %5346 = vmatpush3.bf16.msra.mxu1 %v6045_v55 }
 0x3dd   :  { %5323 = vmatprep.subr.bf16.mxu0 %v6895_v59  ;;  %5347 = vmatprep.subr.bf16.mxu1 %v6895_v59 }
 0x3e0   :  { %5325 = vmatpush3.bf16.msra.mxu0 %v6054_v61  ;;  %5349 = vmatpush3.bf16.msra.mxu1 %v6058_v62 }
 0x3e1   :  { %5326 = vmatprep.subr.bf16.mxu0 %v6895_v59  ;;  %5350 = vmatprep.subr.bf16.mxu1 %v6895_v59 }
 0x3e4   :  { %5328 = vmatpush3.bf16.msra.mxu0 %v6067_v5  ;;  %5352 = vmatpush3.bf16.msra.mxu1 %v6071_v6 }
 0x3e5   :  { %5329 = vmatprep.subr.bf16.mxu0 %v6895_v59  ;;  %5353 = vmatprep.subr.bf16.mxu1 %v6895_v59 }
 0x3e8   :  { %5331 = vmatpush3.bf16.msra.mxu0 %v6080_v12  ;;  %5355 = vmatpush3.bf16.msra.mxu1 %v6084_v13 }
 0x3e9   :  { %5332 = vmatprep.subr.bf16.mxu0 %v6895_v59  ;;  %5356 = vmatprep.subr.bf16.mxu1 %v6895_v59 }
 0x3ec   :  { %5334 = vmatpush3.bf16.msra.mxu0 %v6093_v19  ;;  %5358 = vmatpush3.bf16.msra.mxu1 %v6097_v20 }
 0x3ed   :  { %5335 = vmatprep.subr.bf16.mxu0 %v6895_v59  ;;  %5359 = vmatprep.subr.bf16.mxu1 %v6895_v59 }
 0x3f0   :  { %5337 = vmatpush3.bf16.msra.mxu0 %v6106_v26  ;;  %5361 = vmatpush3.bf16.msra.mxu1 %v6110_v27 }
 0x3f1   :  { %5362 = vmatprep.subr.bf16.mxu0 %v6895_v59  ;;  %5386 = vmatprep.subr.bf16.mxu1 %v6895_v59 }
 0x486   :  { %v1498_v52 = vpop.f32.mrb[28].mxu0  ;;  %v1575_v43 = vpop.f32.mrb[28].mxu1 }
 0x487   :  { %v1502_v34 = vadd.f32 %v1498_v52, %v6897_v1  ;;  %v1579_v37 = vadd.f32 %v1575_v43, %v6898_v46  ;;  %v4165_v40 = vpop.f32.mrb[29].mxu0  ;;  %v4200_v25 = vpop.f32.mrb[29].mxu1 }
 0x488   :  { %v6901_v25 = vld [vmem:[#allocation14_spill] sm:$0xff] }
 0x489   :  { %v3133_v0 = vmul.f32 -1.442695, %v1579_v37  ;;  %v3132_v44 = vmul.f32 -1.442695, %v1502_v34 }
 0x48b   :  { %5780 = vpow2.f32 %v3133_v0 }
 0x48c   :  { %5782 = vpow2.f32 %v3132_v44  ;;  %v6902_v44 = vld [vmem:[#allocation16_spill] sm:$0xff] }
 0x495   :  { %v5781_v63 = vpop.eup %5780 }
 0x496   :  { %v5783_v51 = vpop.eup %5782  ;;  %v1583_v8 = vadd.f32 1.0, %v5781_v63 }
 0x497   :  { %v1506_v60 = vadd.f32 1.0, %v5783_v51 }
 0x498   :  { %5784 = vrcp.f32 %v1583_v8 }
 0x499   :  { %5786 = vrcp.f32 %v1506_v60 }
 0x4a2   :  { %v5785_v14 = vpop.eup %5784 }
 0x4a3   :  { %v5787_v53 = vpop.eup %5786  ;;  %v1735_v30 = vmul.f32 %v5785_v14, %v6482_v22  ;;  %v6904_v14 = vld [vmem:[#allocation17_spill] sm:$0xff] }
 0x4a6   :  { %v1652_v15 = vpop.f32.mrb[30].mxu0  ;;  %v1724_v16 = vpop.f32.mrb[30].mxu1 }
 0x4a7   :  { %v1656_v24 = vadd.f32 %v1652_v15, %v6899_v17  ;;  %v1728_v36 = vadd.f32 %v1724_v16, %v6900_v9  ;;  %v4235_v45 = vpop.f32.mrb[31].mxu0  ;;  %v4270_v56 = vpop.f32.mrb[31].mxu1 }
 0x4a8   :  { %v6903_v56 = vld [vmem:[#allocation15_spill] sm:$0xff] }
 0x4a9   :  { %5788 = vtanh.f32 %v1656_v24  ;;  %v3134_v7 = vmul.f32 -1.442695, %v1728_v36 }
 0x4ab   :  { %5790 = vpow2.f32 %v3134_v7 }
 0x4b3   :  { %v5789_v23 = vpop.eup %5788 }
 0x4b4   :  { %v1736_v35 = vmul.f32 %v5789_v23, %v5787_v53 }
 0x4b5   :  { %v5791_v52 = vpop.eup %5790 }
 0x4b6   :  { %v6562_v43 = vadd.f32 %v1736_v35, %v1735_v30  ;;  %v1732_v1 = vadd.f32 1.0, %v5791_v52 }
 0x4b8   :  { %5792 = vtanh.f32 %v6562_v43 }
 0x4b9   :  { %5794 = vrcp.f32 %v1732_v1 }
 0x4c2   :  { %v5793_v34 = vpop.eup %5792 }
 0x4c3   :  { %v5795_v46 = vpop.eup %5794 }
 0x4c4   :  { %v1739_v37 = vmul.f32 %v5795_v46, %v5793_v34 }
 0x4c6   :  { %4304 = vmatmul.mubr.f32.vlgmr.msra.gmra.mrb[32].mxu0 %v1739_v37  ;;  %4339 = vmatmul.mubr.f32.vlgmr.msra.gmra.mrb[32].mxu1 %v1739_v37 }
 0x4c7   :  { %5364 = vmatpush3.bf16.msra.mxu0 %v6116_v32  ;;  %5388 = vmatpush3.bf16.msra.mxu1 %v6121_v33 }
 0x4c8   :  { %5365 = vmatprep.subr.bf16.mxu0 %v6895_v59  ;;  %5389 = vmatprep.subr.bf16.mxu1 %v6895_v59 }
 0x4c9   :  { %4373 = vmatprep.mubr.msk.f32.mxu0 %vm5939_vm0, %v6896_v4  ;;  %4408 = vmatprep.mubr.msk.f32.mxu1 %vm5939_vm0, %v6896_v4 }
 0x4cb   :  { %5367 = vmatpush3.bf16.msra.mxu0 %v6130_v38  ;;  %5391 = vmatpush3.bf16.msra.mxu1 %v6134_v42 }
 0x4cc   :  { %5368 = vmatprep.subr.bf16.mxu0 %v6895_v59  ;;  %5392 = vmatprep.subr.bf16.mxu1 %v6895_v59 }
 0x4cf   :  { %5370 = vmatpush3.bf16.msra.mxu0 %v6142_v49  ;;  %5394 = vmatpush3.bf16.msra.mxu1 %v6146_v50 }
 0x4d0   :  { %5371 = vmatprep.subr.bf16.mxu0 %v6895_v59  ;;  %5395 = vmatprep.subr.bf16.mxu1 %v6895_v59 }
 0x4d3   :  { %5373 = vmatpush3.bf16.msra.mxu0 %v6150_v57  ;;  %5397 = vmatpush3.bf16.msra.mxu1 %v6154_v58 }
 0x4d4   :  { %5374 = vmatprep.subr.bf16.mxu0 %v6895_v59  ;;  %5398 = vmatprep.subr.bf16.mxu1 %v6895_v59 }
 0x4d7   :  { %5376 = vmatpush3.bf16.msra.mxu0 %v6158_v2  ;;  %5400 = vmatpush3.bf16.msra.mxu1 %v6162_v3 }
 0x4d8   :  { %5377 = vmatprep.subr.bf16.mxu0 %v6895_v59  ;;  %5401 = vmatprep.subr.bf16.mxu1 %v6895_v59 }
 0x4db   :  { %5379 = vmatpush3.bf16.msra.mxu0 %v6166_v10  ;;  %5403 = vmatpush3.bf16.msra.mxu1 %v6170_v11 }
 0x4dc   :  { %5380 = vmatprep.subr.bf16.mxu0 %v6895_v59  ;;  %5404 = vmatprep.subr.bf16.mxu1 %v6895_v59 }
 0x4df   :  { %5382 = vmatpush3.bf16.msra.mxu0 %v6174_v18  ;;  %5406 = vmatpush3.bf16.msra.mxu1 %v6178_v21 }
 0x4e0   :  { %5383 = vmatprep.subr.bf16.mxu0 %v6895_v59  ;;  %5407 = vmatprep.subr.bf16.mxu1 %v6895_v59 }
 0x4e3   :  { %5385 = vmatpush3.bf16.msra.mxu0 %v6182_v28  ;;  %5409 = vmatpush3.bf16.msra.mxu1 %v6186_v29 }
 0x4e4   :  { %5410 = vmatprep.subr.bf16.mxu0 %v6895_v59  ;;  %5434 = vmatprep.subr.bf16.mxu1 %v6895_v59 }
 0x4e6   :  { %4374 = vmatmul.mubr.f32.vlgmr.msra.gmra.mrb[34].mxu0 %v1739_v37  ;;  %4409 = vmatmul.mubr.f32.vlgmr.msra.gmra.mrb[34].mxu1 %v1739_v37 }
 0x4e7   :  { %5412 = vmatpush3.bf16.msra.mxu0 %v6018_v39  ;;  %5436 = vmatpush3.bf16.msra.mxu1 %v6021_v41 }
 0x4e8   :  { %5413 = vmatprep.subr.bf16.mxu0 %v6895_v59  ;;  %5437 = vmatprep.subr.bf16.mxu1 %v6895_v59 }
 0x4e9   :  { %4443 = vmatprep.mubr.msk.f32.mxu0 %vm5939_vm0, %v6896_v4  ;;  %4478 = vmatprep.mubr.msk.f32.mxu1 %vm5939_vm0, %v6896_v4 }
 0x4eb   :  { %5415 = vmatpush3.bf16.msra.mxu0 %v6028_v47  ;;  %5439 = vmatpush3.bf16.msra.mxu1 %v6032_v48 }
 0x4ec   :  { %5416 = vmatprep.subr.bf16.mxu0 %v6895_v59  ;;  %5440 = vmatprep.subr.bf16.mxu1 %v6895_v59 }
 0x4ef   :  { %5418 = vmatpush3.bf16.msra.mxu0 %v6041_v54  ;;  %5442 = vmatpush3.bf16.msra.mxu1 %v6045_v55 }
 0x4f0   :  { %5419 = vmatprep.subr.bf16.mxu0 %v6895_v59  ;;  %5443 = vmatprep.subr.bf16.mxu1 %v6895_v59 }
 0x4f3   :  { %5421 = vmatpush3.bf16.msra.mxu0 %v6054_v61  ;;  %5445 = vmatpush3.bf16.msra.mxu1 %v6058_v62 }
 0x4f4   :  { %5422 = vmatprep.subr.bf16.mxu0 %v6895_v59  ;;  %5446 = vmatprep.subr.bf16.mxu1 %v6895_v59 }
 0x4f7   :  { %5424 = vmatpush3.bf16.msra.mxu0 %v6067_v5  ;;  %5448 = vmatpush3.bf16.msra.mxu1 %v6071_v6 }
 0x4f8   :  { %5425 = vmatprep.subr.bf16.mxu0 %v6895_v59  ;;  %5449 = vmatprep.subr.bf16.mxu1 %v6895_v59 }
 0x4fb   :  { %5427 = vmatpush3.bf16.msra.mxu0 %v6080_v12  ;;  %5451 = vmatpush3.bf16.msra.mxu1 %v6084_v13 }
 0x4fc   :  { %5428 = vmatprep.subr.bf16.mxu0 %v6895_v59  ;;  %5452 = vmatprep.subr.bf16.mxu1 %v6895_v59 }
 0x4ff   :  { %5430 = vmatpush3.bf16.msra.mxu0 %v6093_v19  ;;  %5454 = vmatpush3.bf16.msra.mxu1 %v6097_v20 }
 0x500   :  { %5431 = vmatprep.subr.bf16.mxu0 %v6895_v59  ;;  %5455 = vmatprep.subr.bf16.mxu1 %v6895_v59 }
 0x503   :  { %5433 = vmatpush3.bf16.msra.mxu0 %v6106_v26  ;;  %5457 = vmatpush3.bf16.msra.mxu1 %v6110_v27 }
 0x504   :  { %5458 = vmatprep.subr.bf16.mxu0 %v6895_v59  ;;  %5482 = vmatprep.subr.bf16.mxu1 %v6895_v59 }
 0x599   :  { %v1813_v22 = vpop.f32.mrb[32].mxu0  ;;  %v1890_v40 = vpop.f32.mrb[32].mxu1 }
 0x59a   :  { %v1817_v0 = vadd.f32 %v1813_v22, %v6901_v25  ;;  %v1894_v63 = vadd.f32 %v1890_v40, %v6902_v44  ;;  %v4305_v51 = vpop.f32.mrb[33].mxu0  ;;  %v4340_v8 = vpop.f32.mrb[33].mxu1 }
 0x59b   :  { %v6905_v8 = vld [vmem:[#allocation18_spill] sm:$0xff] }
 0x59c   :  { %v3136_v60 = vmul.f32 -1.442695, %v1894_v63  ;;  %v3135_v15 = vmul.f32 -1.442695, %v1817_v0 }
 0x59e   :  { %5796 = vpow2.f32 %v3136_v60 }
 0x59f   :  { %5798 = vpow2.f32 %v3135_v15  ;;  %v6906_v15 = vld [vmem:[#allocation20_spill] sm:$0xff] }
 0x5a8   :  { %v5797_v16 = vpop.eup %5796 }
 0x5a9   :  { %v5799_v17 = vpop.eup %5798  ;;  %v1898_v24 = vadd.f32 1.0, %v5797_v16 }
 0x5aa   :  { %v1821_v9 = vadd.f32 1.0, %v5799_v17 }
 0x5ab   :  { %5800 = vrcp.f32 %v1898_v24 }
 0x5ac   :  { %5802 = vrcp.f32 %v1821_v9 }
 0x5b5   :  { %v5801_v52 = vpop.eup %5800 }
 0x5b6   :  { %v5803_v1 = vpop.eup %5802  ;;  %v2050_v46 = vmul.f32 %v5801_v52, %v6562_v43  ;;  %v6908_v52 = vld [vmem:[#allocation21_spill] sm:$0xff] }
 0x5b9   :  { %v1967_v36 = vpop.f32.mrb[34].mxu0  ;;  %v2039_v45 = vpop.f32.mrb[34].mxu1 }
 0x5ba   :  { %v1971_v7 = vadd.f32 %v1967_v36, %v6903_v56  ;;  %v2043_v53 = vadd.f32 %v2039_v45, %v6904_v14  ;;  %v4375_v23 = vpop.f32.mrb[35].mxu0  ;;  %v4410_v30 = vpop.f32.mrb[35].mxu1 }
 0x5bb   :  { %v6907_v30 = vld [vmem:[#allocation19_spill] sm:$0xff] }
 0x5bc   :  { %5804 = vtanh.f32 %v1971_v7  ;;  %v3137_v35 = vmul.f32 -1.442695, %v2043_v53 }
 0x5be   :  { %5806 = vpow2.f32 %v3137_v35 }
 0x5c6   :  { %v5805_v34 = vpop.eup %5804 }
 0x5c7   :  { %v2051_v37 = vmul.f32 %v5805_v34, %v5803_v1 }
 0x5c8   :  { %v5807_v22 = vpop.eup %5806 }
 0x5c9   :  { %v6642_v40 = vadd.f32 %v2051_v37, %v2050_v46  ;;  %v2047_v25 = vadd.f32 1.0, %v5807_v22 }
 0x5cb   :  { %5808 = vtanh.f32 %v6642_v40 }
 0x5cc   :  { %5810 = vrcp.f32 %v2047_v25 }
 0x5d5   :  { %v5809_v0 = vpop.eup %5808 }
 0x5d6   :  { %v5811_v44 = vpop.eup %5810 }
 0x5d7   :  { %v2054_v63 = vmul.f32 %v5811_v44, %v5809_v0 }
 0x5d9   :  { %4444 = vmatmul.mubr.f32.vlgmr.msra.gmra.mrb[36].mxu0 %v2054_v63  ;;  %4479 = vmatmul.mubr.f32.vlgmr.msra.gmra.mrb[36].mxu1 %v2054_v63 }
 0x5da   :  { %5460 = vmatpush3.bf16.msra.mxu0 %v6116_v32  ;;  %5484 = vmatpush3.bf16.msra.mxu1 %v6121_v33 }
 0x5db   :  { %5461 = vmatprep.subr.bf16.mxu0 %v6895_v59  ;;  %5485 = vmatprep.subr.bf16.mxu1 %v6895_v59 }
 0x5dc   :  { %4513 = vmatprep.mubr.msk.f32.mxu0 %vm5939_vm0, %v6896_v4  ;;  %4548 = vmatprep.mubr.msk.f32.mxu1 %vm5939_vm0, %v6896_v4 }
 0x5de   :  { %5463 = vmatpush3.bf16.msra.mxu0 %v6130_v38  ;;  %5487 = vmatpush3.bf16.msra.mxu1 %v6134_v42 }
 0x5df   :  { %5464 = vmatprep.subr.bf16.mxu0 %v6895_v59  ;;  %5488 = vmatprep.subr.bf16.mxu1 %v6895_v59 }
 0x5e2   :  { %5466 = vmatpush3.bf16.msra.mxu0 %v6142_v49  ;;  %5490 = vmatpush3.bf16.msra.mxu1 %v6146_v50 }
 0x5e3   :  { %5467 = vmatprep.subr.bf16.mxu0 %v6895_v59  ;;  %5491 = vmatprep.subr.bf16.mxu1 %v6895_v59 }
 0x5e6   :  { %5469 = vmatpush3.bf16.msra.mxu0 %v6150_v57  ;;  %5493 = vmatpush3.bf16.msra.mxu1 %v6154_v58 }
 0x5e7   :  { %5470 = vmatprep.subr.bf16.mxu0 %v6895_v59  ;;  %5494 = vmatprep.subr.bf16.mxu1 %v6895_v59 }
 0x5ea   :  { %5472 = vmatpush3.bf16.msra.mxu0 %v6158_v2  ;;  %5496 = vmatpush3.bf16.msra.mxu1 %v6162_v3 }
 0x5eb   :  { %5473 = vmatprep.subr.bf16.mxu0 %v6895_v59  ;;  %5497 = vmatprep.subr.bf16.mxu1 %v6895_v59 }
 0x5ee   :  { %5475 = vmatpush3.bf16.msra.mxu0 %v6166_v10  ;;  %5499 = vmatpush3.bf16.msra.mxu1 %v6170_v11 }
 0x5ef   :  { %5476 = vmatprep.subr.bf16.mxu0 %v6895_v59  ;;  %5500 = vmatprep.subr.bf16.mxu1 %v6895_v59 }
 0x5f2   :  { %5478 = vmatpush3.bf16.msra.mxu0 %v6174_v18  ;;  %5502 = vmatpush3.bf16.msra.mxu1 %v6178_v21 }
 0x5f3   :  { %5479 = vmatprep.subr.bf16.mxu0 %v6895_v59  ;;  %5503 = vmatprep.subr.bf16.mxu1 %v6895_v59 }
 0x5f6   :  { %5481 = vmatpush3.bf16.msra.mxu0 %v6182_v28  ;;  %5505 = vmatpush3.bf16.msra.mxu1 %v6186_v29 }
 0x5f7   :  { %5506 = vmatprep.subr.bf16.mxu0 %v6895_v59  ;;  %5530 = vmatprep.subr.bf16.mxu1 %v6895_v59 }
 0x5f9   :  { %4514 = vmatmul.mubr.f32.vlgmr.msra.gmra.mrb[38].mxu0 %v2054_v63  ;;  %4549 = vmatmul.mubr.f32.vlgmr.msra.gmra.mrb[38].mxu1 %v2054_v63 }
 0x5fa   :  { %5508 = vmatpush3.bf16.msra.mxu0 %v6018_v39  ;;  %5532 = vmatpush3.bf16.msra.mxu1 %v6021_v41 }
 0x5fb   :  { %5509 = vmatprep.subr.bf16.mxu0 %v6895_v59  ;;  %5533 = vmatprep.subr.bf16.mxu1 %v6895_v59 }
 0x5fc   :  { %4583 = vmatprep.mubr.msk.f32.mxu0 %vm5939_vm0, %v6896_v4  ;;  %4618 = vmatprep.mubr.msk.f32.mxu1 %vm5939_vm0, %v6896_v4 }
 0x5fe   :  { %5511 = vmatpush3.bf16.msra.mxu0 %v6028_v47  ;;  %5535 = vmatpush3.bf16.msra.mxu1 %v6032_v48 }
 0x5ff   :  { %5512 = vmatprep.subr.bf16.mxu0 %v6895_v59  ;;  %5536 = vmatprep.subr.bf16.mxu1 %v6895_v59 }
 0x602   :  { %5514 = vmatpush3.bf16.msra.mxu0 %v6041_v54  ;;  %5538 = vmatpush3.bf16.msra.mxu1 %v6045_v55 }
 0x603   :  { %5515 = vmatprep.subr.bf16.mxu0 %v6895_v59  ;;  %5539 = vmatprep.subr.bf16.mxu1 %v6895_v59 }
 0x606   :  { %5517 = vmatpush3.bf16.msra.mxu0 %v6054_v61  ;;  %5541 = vmatpush3.bf16.msra.mxu1 %v6058_v62 }
 0x607   :  { %5518 = vmatprep.subr.bf16.mxu0 %v6895_v59  ;;  %5542 = vmatprep.subr.bf16.mxu1 %v6895_v59 }
 0x60a   :  { %5520 = vmatpush3.bf16.msra.mxu0 %v6067_v5  ;;  %5544 = vmatpush3.bf16.msra.mxu1 %v6071_v6 }
 0x60b   :  { %5521 = vmatprep.subr.bf16.mxu0 %v6895_v59  ;;  %5545 = vmatprep.subr.bf16.mxu1 %v6895_v59 }
 0x60e   :  { %5523 = vmatpush3.bf16.msra.mxu0 %v6080_v12  ;;  %5547 = vmatpush3.bf16.msra.mxu1 %v6084_v13 }
 0x60f   :  { %5524 = vmatprep.subr.bf16.mxu0 %v6895_v59  ;;  %5548 = vmatprep.subr.bf16.mxu1 %v6895_v59 }
 0x612   :  { %5526 = vmatpush3.bf16.msra.mxu0 %v6093_v19  ;;  %5550 = vmatpush3.bf16.msra.mxu1 %v6097_v20 }
 0x613   :  { %5527 = vmatprep.subr.bf16.mxu0 %v6895_v59  ;;  %5551 = vmatprep.subr.bf16.mxu1 %v6895_v59 }
 0x616   :  { %5529 = vmatpush3.bf16.msra.mxu0 %v6106_v26  ;;  %5553 = vmatpush3.bf16.msra.mxu1 %v6110_v27 }
 0x617   :  { %5554 = vmatprep.subr.bf16.mxu0 %v6895_v59  ;;  %5578 = vmatprep.subr.bf16.mxu1 %v6895_v59 }
 0x6ac   :  { %v2128_v43 = vpop.f32.mrb[36].mxu0  ;;  %v2205_v51 = vpop.f32.mrb[36].mxu1 }
 0x6ad   :  { %v2132_v60 = vadd.f32 %v2128_v43, %v6905_v8  ;;  %v2209_v16 = vadd.f32 %v2205_v51, %v6906_v15  ;;  %v4445_v17 = vpop.f32.mrb[37].mxu0  ;;  %v4480_v24 = vpop.f32.mrb[37].mxu1 }
 0x6ae   :  { %v6912_v24 = vld [vmem:[#allocation25_spill] sm:$0xff] }
 0x6af   :  { %v3139_v9 = vmul.f32 -1.442695, %v2209_v16  ;;  %v3138_v36 = vmul.f32 -1.442695, %v2132_v60 }
 0x6b1   :  { %5812 = vpow2.f32 %v3139_v9 }
 0x6b2   :  { %5814 = vpow2.f32 %v3138_v36 }
 0x6bb   :  { %v5813_v45 = vpop.eup %5812 }
 0x6bc   :  { %v5815_v56 = vpop.eup %5814  ;;  %v2213_v7 = vadd.f32 1.0, %v5813_v45 }
 0x6bd   :  { %v2136_v14 = vadd.f32 1.0, %v5815_v56 }
 0x6be   :  { %5816 = vrcp.f32 %v2213_v7 }
 0x6bf   :  { %5818 = vrcp.f32 %v2136_v14 }
 0x6c8   :  { %v5817_v22 = vpop.eup %5816 }
 0x6c9   :  { %v5819_v25 = vpop.eup %5818  ;;  %v2365_v44 = vmul.f32 %v5817_v22, %v6642_v40  ;;  %v6911_v40 = vld [vmem:[#allocation23_spill] sm:$0xff] }
 0x6cc   :  { %v2282_v53 = vpop.f32.mrb[38].mxu0  ;;  %v2354_v23 = vpop.f32.mrb[38].mxu1 }
 0x6cd   :  { %v2286_v35 = vadd.f32 %v2282_v53, %v6907_v30  ;;  %v2358_v1 = vadd.f32 %v2354_v23, %v6908_v52  ;;  %v4515_v34 = vpop.f32.mrb[39].mxu0  ;;  %v4550_v46 = vpop.f32.mrb[39].mxu1 }
 0x6cf   :  { %5820 = vtanh.f32 %v2286_v35  ;;  %v3140_v37 = vmul.f32 -1.442695, %v2358_v1 }
 0x6d1   :  { %5822 = vpow2.f32 %v3140_v37 }
 0x6d9   :  { %v5821_v0 = vpop.eup %5820 }
 0x6da   :  { %v2366_v63 = vmul.f32 %v5821_v0, %v5819_v25  ;;  %v3012_v25 = vld [vmem:[#allocation7 + $0x60] sm:$0xff]  ;;  %v3013_v0 = vld [vmem:[#allocation7 + $0x68] sm:$0xff] }
 0x6db   :  { %v5823_v43 = vpop.eup %5822 }
 0x6dc   :  { %v6722_v51 = vadd.f32 %v2366_v63, %v2365_v44  ;;  %v2362_v8 = vadd.f32 1.0, %v5823_v43  ;;  %v5717_v44 = vpack.c.bf16 %v3013_v0, %v3012_v25  ;;  %v3014_v63 = vld [vmem:[#allocation7 + $0x70] sm:$0xff]  ;;  %v3015_v43 = vld [vmem:[#allocation7 + $0x78] sm:$0xff] }
 0x6de   :  { %5824 = vtanh.f32 %v6722_v51 }
 0x6df   :  { %5826 = vrcp.f32 %v2362_v8 }
 0x6e8   :  { %v5825_v60 = vpop.eup %5824 }
 0x6e9   :  { %v5827_v15 = vpop.eup %5826 }
 0x6ea   :  { %v2369_v16 = vmul.f32 %v5827_v15, %v5825_v60  ;;  %v6913_v15 = vld [vmem:[#allocation26_spill] sm:$0xff] }
 0x6ec   :  { %4584 = vmatmul.mubr.f32.vlgmr.msra.gmra.mrb[40].mxu0 %v2369_v16  ;;  %4619 = vmatmul.mubr.f32.vlgmr.msra.gmra.mrb[40].mxu1 %v2369_v16 }
 0x6ed   :  { %5556 = vmatpush3.bf16.msra.mxu0 %v6116_v32  ;;  %5580 = vmatpush3.bf16.msra.mxu1 %v6121_v33 }
 0x6ee   :  { %5557 = vmatprep.subr.bf16.mxu0 %v6895_v59  ;;  %5581 = vmatprep.subr.bf16.mxu1 %v6895_v59 }
 0x6ef   :  { %4653 = vmatprep.mubr.msk.f32.mxu0 %vm5939_vm0, %v6896_v4  ;;  %4688 = vmatprep.mubr.msk.f32.mxu1 %vm5939_vm0, %v6896_v4 }
 0x6f1   :  { %5559 = vmatpush3.bf16.msra.mxu0 %v6130_v38  ;;  %5583 = vmatpush3.bf16.msra.mxu1 %v6134_v42 }
 0x6f2   :  { %5560 = vmatprep.subr.bf16.mxu0 %v6895_v59  ;;  %5584 = vmatprep.subr.bf16.mxu1 %v6895_v59 }
 0x6f5   :  { %5562 = vmatpush3.bf16.msra.mxu0 %v6142_v49  ;;  %5586 = vmatpush3.bf16.msra.mxu1 %v6146_v50 }
 0x6f6   :  { %5563 = vmatprep.subr.bf16.mxu0 %v6895_v59  ;;  %5587 = vmatprep.subr.bf16.mxu1 %v6895_v59 }
 0x6f9   :  { %5565 = vmatpush3.bf16.msra.mxu0 %v6150_v57  ;;  %5589 = vmatpush3.bf16.msra.mxu1 %v6154_v58 }
 0x6fa   :  { %5566 = vmatprep.subr.bf16.mxu0 %v6895_v59  ;;  %5590 = vmatprep.subr.bf16.mxu1 %v6895_v59 }
 0x6fd   :  { %5568 = vmatpush3.bf16.msra.mxu0 %v6158_v2  ;;  %5592 = vmatpush3.bf16.msra.mxu1 %v6162_v3 }
 0x6fe   :  { %5569 = vmatprep.subr.bf16.mxu0 %v6895_v59  ;;  %5593 = vmatprep.subr.bf16.mxu1 %v6895_v59 }
 0x701   :  { %5571 = vmatpush3.bf16.msra.mxu0 %v6166_v10  ;;  %5595 = vmatpush3.bf16.msra.mxu1 %v6170_v11 }
 0x702   :  { %5572 = vmatprep.subr.bf16.mxu0 %v6895_v59  ;;  %5596 = vmatprep.subr.bf16.mxu1 %v6895_v59 }
 0x705   :  { %5574 = vmatpush3.bf16.msra.mxu0 %v6174_v18  ;;  %5598 = vmatpush3.bf16.msra.mxu1 %v6178_v21 }
 0x706   :  { %5575 = vmatprep.subr.bf16.mxu0 %v6895_v59  ;;  %5599 = vmatprep.subr.bf16.mxu1 %v6895_v59 }
 0x709   :  { %5577 = vmatpush3.bf16.msra.mxu0 %v6182_v28  ;;  %5601 = vmatpush3.bf16.msra.mxu1 %v6186_v29 }
 0x70a   :  { %5602 = vmatprep.subr.bf16.mxu0 %v6895_v59  ;;  %5626 = vmatprep.subr.bf16.mxu1 %v6895_v59 }
 0x70c   :  { %4654 = vmatmul.mubr.f32.vlgmr.msra.gmra.mrb[42].mxu0 %v2369_v16  ;;  %4689 = vmatmul.mubr.f32.vlgmr.msra.gmra.mrb[42].mxu1 %v2369_v16 }
 0x70d   :  { %5604 = vmatpush3.bf16.msra.mxu0 %v6018_v39  ;;  %5628 = vmatpush3.bf16.msra.mxu1 %v6021_v41 }
 0x70e   :  { %5605 = vmatprep.subr.bf16.mxu0 %v6895_v59  ;;  %5629 = vmatprep.subr.bf16.mxu1 %v6895_v59 }
 0x70f   :  { %4723 = vmatprep.mubr.msk.f32.mxu0 %vm5939_vm0, %v6896_v4  ;;  %4758 = vmatprep.mubr.msk.f32.mxu1 %vm5939_vm0, %v6896_v4 }
 0x711   :  { %5607 = vmatpush3.bf16.msra.mxu0 %v6028_v47  ;;  %5631 = vmatpush3.bf16.msra.mxu1 %v6032_v48  ;;  %v6909_v47 = vld [vmem:[#allocation22_spill] sm:$0xff] }
 0x712   :  { %5608 = vmatprep.subr.bf16.mxu0 %v6895_v59  ;;  %5632 = vmatprep.subr.bf16.mxu1 %v6895_v59 }
 0x715   :  { %5610 = vmatpush3.bf16.msra.mxu0 %v6041_v54  ;;  %5634 = vmatpush3.bf16.msra.mxu1 %v6045_v55  ;;  %v6910_v54 = vld [vmem:[#allocation24_spill] sm:$0xff] }
 0x716   :  { %5611 = vmatprep.subr.bf16.mxu0 %v6895_v59  ;;  %5635 = vmatprep.subr.bf16.mxu1 %v6895_v59 }
 0x719   :  { %5613 = vmatpush3.bf16.msra.mxu0 %v6054_v61  ;;  %5637 = vmatpush3.bf16.msra.mxu1 %v6058_v62 }
 0x71a   :  { %5614 = vmatprep.subr.bf16.mxu0 %v6895_v59  ;;  %5638 = vmatprep.subr.bf16.mxu1 %v6895_v59 }
 0x71d   :  { %5616 = vmatpush3.bf16.msra.mxu0 %v6067_v5  ;;  %5640 = vmatpush3.bf16.msra.mxu1 %v6071_v6 }
 0x71e   :  { %5617 = vmatprep.subr.bf16.mxu0 %v6895_v59  ;;  %5641 = vmatprep.subr.bf16.mxu1 %v6895_v59 }
 0x721   :  { %5619 = vmatpush3.bf16.msra.mxu0 %v6080_v12  ;;  %5643 = vmatpush3.bf16.msra.mxu1 %v6084_v13 }
 0x722   :  { %5620 = vmatprep.subr.bf16.mxu0 %v6895_v59  ;;  %5644 = vmatprep.subr.bf16.mxu1 %v6895_v59 }
 0x725   :  { %5622 = vmatpush3.bf16.msra.mxu0 %v6093_v19  ;;  %5646 = vmatpush3.bf16.msra.mxu1 %v6097_v20 }
 0x726   :  { %5623 = vmatprep.subr.bf16.mxu0 %v6895_v59  ;;  %5647 = vmatprep.subr.bf16.mxu1 %v6895_v59 }
 0x729   :  { %5625 = vmatpush3.bf16.msra.mxu0 %v6106_v26  ;;  %5649 = vmatpush3.bf16.msra.mxu1 %v6110_v27 }
 0x72a   :  { %5650 = vmatprep.subr.bf16.mxu0 %v6895_v59  ;;  %5674 = vmatprep.subr.bf16.mxu1 %v6895_v59 }
 0x7bf   :  { %v2443_v39 = vpop.f32.mrb[40].mxu0  ;;  %v2520_v41 = vpop.f32.mrb[40].mxu1 }
 0x7c0   :  { %v2447_v48 = vadd.f32 %v2443_v39, %v6909_v47  ;;  %v2524_v55 = vadd.f32 %v2520_v41, %v6910_v54  ;;  %v4585_v61 = vpop.f32.mrb[41].mxu0  ;;  %v4620_v62 = vpop.f32.mrb[41].mxu1  ;;  %v6914_v39 = vld [vmem:[#allocation28_spill] sm:$0xff] }
 0x7c2   :  { %v3142_v5 = vmul.f32 -1.442695, %v2524_v55  ;;  %v3141_v6 = vmul.f32 -1.442695, %v2447_v48 }
 0x7c4   :  { %5828 = vpow2.f32 %v3142_v5 }
 0x7c5   :  { %5830 = vpow2.f32 %v3141_v6 }
 0x7ce   :  { %v5829_v12 = vpop.eup %5828 }
 0x7cf   :  { %v5831_v13 = vpop.eup %5830  ;;  %v2528_v19 = vadd.f32 1.0, %v5829_v12 }
 0x7d0   :  { %v2451_v20 = vadd.f32 1.0, %v5831_v13 }
 0x7d1   :  { %5832 = vrcp.f32 %v2528_v19 }
 0x7d2   :  { %5834 = vrcp.f32 %v2451_v20 }
 0x7db   :  { %v5833_v7 = vpop.eup %5832 }
 0x7dc   :  { %v5835_v14 = vpop.eup %5834  ;;  %v2680_v23 = vmul.f32 %v5833_v7, %v6722_v51  ;;  %v5720_v51 = vpack.c.bf16 %v3015_v43, %v3014_v63 }
 0x7df   :  { %v2597_v26 = vpop.f32.mrb[42].mxu0  ;;  %v2669_v27 = vpop.f32.mrb[42].mxu1 }
 0x7e0   :  { %v2601_v17 = vadd.f32 %v2597_v26, %v6911_v40  ;;  %v2673_v9 = vadd.f32 %v2669_v27, %v6912_v24  ;;  %v4655_v36 = vpop.f32.mrb[43].mxu0  ;;  %v4690_v45 = vpop.f32.mrb[43].mxu1 }
 0x7e2   :  { %5836 = vtanh.f32 %v2601_v17  ;;  %v3143_v56 = vmul.f32 -1.442695, %v2673_v9 }
 0x7e4   :  { %5838 = vpow2.f32 %v3143_v56 }
 0x7ec   :  { %v5837_v53 = vpop.eup %5836 }
 0x7ed   :  { %v2681_v30 = vmul.f32 %v5837_v53, %v5835_v14 }
 0x7ee   :  { %v5839_v35 = vpop.eup %5838 }
 0x7ef   :  { %v6802_v52 = vadd.f32 %v2681_v30, %v2680_v23  ;;  %v2677_v1 = vadd.f32 1.0, %v5839_v35  ;;  %v3147_v30 = vld [vmem:[%s6870_s4 + $0x4] ss:$0 sm:$0xff] }
 0x7f1   :  { %5840 = vtanh.f32 %v6802_v52 }
 0x7f2   :  { %5842 = vrcp.f32 %v2677_v1 }
 0x7fb   :  { %v5841_v34 = vpop.eup %5840 }
 0x7fc   :  { %v5843_v46 = vpop.eup %5842 }
 0x7fd   :  { %v2684_v37 = vmul.f32 %v5843_v46, %v5841_v34 }
 0x7ff   :  { %4724 = vmatmul.mubr.f32.vlgmr.msra.gmra.mrb[44].mxu0 %v2684_v37  ;;  %4759 = vmatmul.mubr.f32.vlgmr.msra.gmra.mrb[44].mxu1 %v2684_v37 }
 0x800   :  { %5652 = vmatpush3.bf16.msra.mxu0 %v6116_v32  ;;  %5676 = vmatpush3.bf16.msra.mxu1 %v6121_v33  ;;  %v3000_v32 = vld [vmem:[#allocation7] sm:$0xff]  ;;  %v3001_v33 = vld [vmem:[#allocation7 + $0x8] sm:$0xff] }
 0x801   :  { %5653 = vmatprep.subr.bf16.mxu0 %v6895_v59  ;;  %5677 = vmatprep.subr.bf16.mxu1 %v6895_v59 }
 0x802   :  { %4793 = vmatprep.mubr.msk.f32.mxu0 %vm5939_vm0, %v6896_v4  ;;  %4828 = vmatprep.mubr.msk.f32.mxu1 %vm5939_vm0, %v6896_v4 }
 0x804   :  { %5655 = vmatpush3.bf16.msra.mxu0 %v6130_v38  ;;  %5679 = vmatpush3.bf16.msra.mxu1 %v6134_v42  ;;  %v5699_v38 = vpack.c.bf16 %v3001_v33, %v3000_v32  ;;  %v3002_v42 = vld [vmem:[#allocation7 + $0x10] sm:$0xff]  ;;  %v3149_v32 = vld [vmem:[%s6870_s4 + $0x6] ss:$0 sm:$0xff] }
 0x805   :  { %5656 = vmatprep.subr.bf16.mxu0 %v6895_v59  ;;  %5680 = vmatprep.subr.bf16.mxu1 %v6895_v59 }
 0x808   :  { %5658 = vmatpush3.bf16.msra.mxu0 %v6142_v49  ;;  %5682 = vmatpush3.bf16.msra.mxu1 %v6146_v50  ;;  %v3003_v49 = vld [vmem:[#allocation7 + $0x18] sm:$0xff] }
 0x809   :  { %5659 = vmatprep.subr.bf16.mxu0 %v6895_v59  ;;  %5683 = vmatprep.subr.bf16.mxu1 %v6895_v59  ;;  %v5702_v50 = vpack.c.bf16 %v3003_v49, %v3002_v42 }
 0x80c   :  { %5661 = vmatpush3.bf16.msra.mxu0 %v6150_v57  ;;  %5685 = vmatpush3.bf16.msra.mxu1 %v6154_v58  ;;  %v3004_v57 = vld [vmem:[#allocation7 + $0x20] sm:$0xff]  ;;  %v3005_v58 = vld [vmem:[#allocation7 + $0x28] sm:$0xff] }
 0x80d   :  { %5662 = vmatprep.subr.bf16.mxu0 %v6895_v59  ;;  %5686 = vmatprep.subr.bf16.mxu1 %v6895_v59 }
 0x810   :  { %5664 = vmatpush3.bf16.msra.mxu0 %v6158_v2  ;;  %5688 = vmatpush3.bf16.msra.mxu1 %v6162_v3  ;;  %v5705_v2 = vpack.c.bf16 %v3005_v58, %v3004_v57  ;;  %v3006_v3 = vld [vmem:[#allocation7 + $0x30] sm:$0xff] }
 0x811   :  { %5665 = vmatprep.subr.bf16.mxu0 %v6895_v59  ;;  %5689 = vmatprep.subr.bf16.mxu1 %v6895_v59 }
 0x814   :  { %5667 = vmatpush3.bf16.msra.mxu0 %v6166_v10  ;;  %5691 = vmatpush3.bf16.msra.mxu1 %v6170_v11  ;;  %v3007_v10 = vld [vmem:[#allocation7 + $0x38] sm:$0xff] }
 0x815   :  { %5668 = vmatprep.subr.bf16.mxu0 %v6895_v59  ;;  %5692 = vmatprep.subr.bf16.mxu1 %v6895_v59  ;;  %v5708_v11 = vpack.c.bf16 %v3007_v10, %v3006_v3 }
 0x818   :  { %5670 = vmatpush3.bf16.msra.mxu0 %v6174_v18  ;;  %5694 = vmatpush3.bf16.msra.mxu1 %v6178_v21  ;;  %v3008_v18 = vld [vmem:[#allocation7 + $0x40] sm:$0xff]  ;;  %v3009_v21 = vld [vmem:[#allocation7 + $0x48] sm:$0xff] }
 0x819   :  { %5671 = vmatprep.subr.bf16.mxu0 %v6895_v59  ;;  %5695 = vmatprep.subr.bf16.mxu1 %v6895_v59 }
 0x81c   :  { %5673 = vmatpush3.bf16.msra.mxu0 %v6182_v28  ;;  %5697 = vmatpush3.bf16.msra.mxu1 %v6186_v29  ;;  %v5711_v28 = vpack.c.bf16 %v3009_v21, %v3008_v18  ;;  %v3010_v29 = vld [vmem:[#allocation7 + $0x50] sm:$0xff] }
 0x81d   :  { %5698 = vmatprep.subr.bf16.mxu0 %v6895_v59 }
 0x81f   :  { %4794 = vmatmul.mubr.f32.vlgmr.msra.gmra.mrb[46].mxu0 %v2684_v37  ;;  %4829 = vmatmul.mubr.f32.vlgmr.msra.gmra.mrb[46].mxu1 %v2684_v37 }
 0x820   :  { %4863 = vmatprep.mubr.msk.f32.mxu0 %vm5939_vm0, %v6896_v4  ;;  %5700 = vmatpush3.bf16.msra.mxu0 %v5699_v38  ;;  %v3011_v4 = vld [vmem:[#allocation7 + $0x58] sm:$0xff] }
 0x821   :  { %5701 = vmatprep.subr.bf16.mxu0 %v6895_v59  ;;  %v5714_v22 = vpack.c.bf16 %v3011_v4, %v3010_v29 }
 0x824   :  { %5703 = vmatpush3.bf16.msra.mxu0 %v5702_v50 }
 0x825   :  { %5704 = vmatprep.subr.bf16.mxu0 %v6895_v59 }
 0x828   :  { %5706 = vmatpush3.bf16.msra.mxu0 %v5705_v2 }
 0x829   :  { %5707 = vmatprep.subr.bf16.mxu0 %v6895_v59 }
 0x82c   :  { %5709 = vmatpush3.bf16.msra.mxu0 %v5708_v11 }
 0x82d   :  { %5710 = vmatprep.subr.bf16.mxu0 %v6895_v59 }
 0x830   :  { %5712 = vmatpush3.bf16.msra.mxu0 %v5711_v28 }
 0x831   :  { %5713 = vmatprep.subr.bf16.mxu0 %v6895_v59 }
 0x834   :  { %5715 = vmatpush3.bf16.msra.mxu0 %v5714_v22 }
 0x835   :  { %5716 = vmatprep.subr.bf16.mxu0 %v6895_v59 }
 0x838   :  { %5718 = vmatpush3.bf16.msra.mxu0 %v5717_v44 }
 0x839   :  { %5719 = vmatprep.subr.bf16.mxu0 %v6895_v59  ;;  %v6915_v59 = vld [vmem:[#allocation27_spill] sm:$0xff] }
 0x83c   :  { %5721 = vmatpush3.bf16.msra.mxu0 %v5720_v51 }
 0x8d2   :  { %v2758_v8 = vpop.f32.mrb[44].mxu0  ;;  %v2835_v60 = vpop.f32.mrb[44].mxu1 }
 0x8d3   :  { %v2762_v16 = vadd.f32 %v2758_v8, %v6913_v15  ;;  %v2839_v41 = vadd.f32 %v2835_v60, %v6914_v39  ;;  %v4725_v47 = vpop.f32.mrb[45].mxu0  ;;  %v4760_v48 = vpop.f32.mrb[45].mxu1 }
 0x8d5   :  { %v3145_v54 = vmul.f32 -1.442695, %v2839_v41  ;;  %v3144_v55 = vmul.f32 -1.442695, %v2762_v16 }
 0x8d7   :  { %5844 = vpow2.f32 %v3145_v54 }
 0x8d8   :  { %5846 = vpow2.f32 %v3144_v55 }
 0x8e1   :  { %v5845_v61 = vpop.eup %5844 }
 0x8e2   :  { %v5847_v62 = vpop.eup %5846  ;;  %v2843_v5 = vadd.f32 1.0, %v5845_v61 }
 0x8e3   :  { %v2766_v6 = vadd.f32 1.0, %v5847_v62 }
 0x8e4   :  { %5848 = vrcp.f32 %v2843_v5 }
 0x8e5   :  { %5850 = vrcp.f32 %v2766_v6 }
 0x8ee   :  { %v5849_v17 = vpop.eup %5848 }
 0x8ef   :  { %v5851_v24 = vpop.eup %5850  ;;  %v2995_v36 = vmul.f32 %v5849_v17, %v6802_v52  ;;  %v3148_v52 = vld [vmem:[%s6870_s4 + $0x5] ss:$0 sm:$0xff] }
 0x8f2   :  { %v2912_v12 = vpop.f32.mrb[46].mxu0  ;;  %v2984_v13 = vpop.f32.mrb[46].mxu1 }
 0x8f3   :  { %v2916_v19 = vadd.f32 %v2912_v12, %v6915_v59  ;;  %v2988_v20 = vadd.f32 %v2984_v13, %v6315_v31  ;;  %v4795_v26 = vpop.f32.mrb[47].mxu0  ;;  %v4830_v27 = vpop.f32.mrb[47].mxu1 }
 0x8f5   :  { %5852 = vtanh.f32 %v2916_v19  ;;  %v3146_v40 = vmul.f32 -1.442695, %v2988_v20 }
 0x8f7   :  { %5854 = vpow2.f32 %v3146_v40 }
 0x8ff   :  { %v5853_v9 = vpop.eup %5852 }
 0x900   :  { %v2996_v45 = vmul.f32 %v5853_v9, %v5851_v24 }
 0x901   :  { %v5855_v56 = vpop.eup %5854 }
 0x902   :  { %v2997_v7 = vadd.f32 %v2996_v45, %v2995_v36  ;;  %v2992_v14 = vadd.f32 1.0, %v5855_v56 }
 0x904   :  { %5856 = vtanh.f32 %v2997_v7 }
 0x905   :  { %5858 = vrcp.f32 %v2992_v14 }
 0x90e   :  { %v5857_v53 = vpop.eup %5856 }
 0x90f   :  { %v5859_v23 = vpop.eup %5858 }
 0x910   :  { %v2999_v31 = vmul.f32 %v5859_v23, %v5857_v53 }
 0x912   :  { %4864 = vmatmul.mubr.f32.vlgmr.msra.gmra.mrb[48].mxu0 %v2999_v31 }
 0x9e5   :  { %v3088_v35 = vpop.f32.mrb[48].mxu0 }
 0x9e6   :  { %v3089_v1 = vadd.f32 %v3147_v30, %v3088_v35  ;;  %v4865_v34 = vpop.f32.mrb[49].mxu0 }
 0x9e8   :  { %v3092_v46 = vmax.f32 %v3089_v1, 0.0 }
 0x9ea   :  { %v3099_v37 = vmul.f32 %v3148_v52, %v3092_v46 }
 0x9ec   :  { %3100 = vadd.xlane.f32.xlu0 %v3099_v37 }
 0xa79   :  { %v3101_v33 = vpop.xlane.xlu0 %3100 }
 0xa7a   :  { %v3108_v38 = vadd.f32 %v3149_v32, %v3101_v33 }
 0xa7c   :  { %3109 = vst [vmem:[%s6871_s5] sm:$0xff] %v3108_v38 }
 0xa7d   :  { %3114 = vsyncpa [#allocation4], 1 }
 0xa7e   :  { %3115 = vsyncpa [#allocation6], 1 }

</bundles_post_ra>
